<compile_context>
chip_gen: v6e
topology: v6e:2x2x1
jax: 0.10.0
libtpu: 0.0.40
codegen_flags: <defaults>
</compile_context>

<pallas_src>
import math
import numpy as np
import jax
import jax.numpy as jnp
from jax.experimental import pallas as pl
from jax.experimental.pallas import tpu as pltpu


# ----------------------------------------------------------------------------
# Parameter slab layout (all weights in one 2-D slab, all bias/dist columns in a
# second slab).  Row offsets are padded to multiples of 8 (sublane alignment).
# ----------------------------------------------------------------------------
def _pad8(x):
    return (x + 7) // 8 * 8


def build_layout(E):
    wspecs = [
        ('w1e', 32, E), ('w2e', 29, 32),
        ('w1o', 3, 3), ('w2o', 3, 3),
        ('w1s', 32, 3 * E), ('w2s', 32, 32),
        ('w1g_s', 32, 3), ('w1g_t', 32, 3), ('w1g_df', 32, 3), ('w2g', 32, 32),
        ('wf_sp', 32, 29), ('wf_or', 32, 3),
        ('w1c', 32, 32), ('w2c', 16, 32),
        ('w1d', 16, 16), ('w2d', 1, 16),
        ('w1w', 16, 16), ('w2w', 1, 16),
    ]
    wmap, off, width = {}, 0, 0
    for name, co, ci in wspecs:
        wmap[name] = (off, co, ci)
        off += _pad8(co)
        width = max(width, ci)
    wrows = off

    bspecs = [
        ('b1e', 32), ('b2e', 29), ('b1o', 3), ('b2o', 3),
        ('b1s', 32), ('w1s_ds', 32), ('b2s', 32),
        ('b1g', 32), ('w1g_ds', 32), ('b2g', 32),
        ('bf', 32), ('b1c', 32), ('b2c', 16),
        ('b1d', 16), ('b2d', 1), ('b1w', 16), ('b2w', 1),
    ]
    bmap = {name: (col, co) for col, (name, co) in enumerate(bspecs)}
    return (wmap, wrows, width, bmap, len(bspecs))


def pack_params(layout, wdict, bdict):
    wmap, wrows, wwidth, bmap, bcols = layout
    wslab = np.zeros((wrows, wwidth), np.float32)
    for name, (off, co, ci) in wmap.items():
        w = np.asarray(wdict[name], np.float32)
        assert w.shape == (co, ci), (name, w.shape, (co, ci))
        wslab[off:off + co, :ci] = w
    bslab = np.zeros((32, bcols), np.float32)
    for name, (col, co) in bmap.items():
        bslab[:co, col] = np.asarray(bdict[name], np.float32).reshape(co)
    return jnp.asarray(wslab), jnp.asarray(bslab)


# ----------------------------------------------------------------------------
# Pallas kernel: one DNET iteration's similarity-matrix / weight-logit hot path.
# One grid step = one batch element.  Pair layout: lane = j*N + i (target-major).
# ----------------------------------------------------------------------------
def make_dnet_kernel(layout, N):
    wmap, _, _, bmap, _ = layout
    NN = N * N
    log2n = int(round(math.log2(N)))

    def kernel(src_ref, tgt_ref, se_ref, te_ref, sp_ref, tp_ref,
               sop_ref, top_ref, wsl_ref, bsl_ref, sim_ref, wlog_ref):
        f32 = jnp.float32

        def W(name):
            off, co, ci = wmap[name]
            return wsl_ref[off:off + co, 0:ci]

        def Bc(name):
            col, co = bmap[name]
            return bsl_ref[0:co, col:col + 1]

        def mm(A, X):
            return jnp.dot(A, X, preferred_element_type=f32)

        def relu(x):
            return jnp.maximum(x, 0.0)

        src = src_ref[0]          # (3, N)
        tgt = tgt_ref[0]          # (3, N)
        se = se_ref[0]            # (E, N)
        te = te_ref[0]            # (E, N)
        sp = sp_ref[0]            # (E, 1)
        tp = tp_ref[0]            # (E, 1)
        sop = sop_ref[0]          # (3, 1)
        top = top_ref[0]          # (3, 1)

        # Pair-expansion selector matrices (built once per batch step):
        #   lane = j*N + i ; a_src picks source point i = lane & (N-1),
        #   a_tgt picks target point j = lane >> log2(N).
        lane = jax.lax.broadcasted_iota(jnp.int32, (N, NN), 1)
        ridx = jax.lax.broadcasted_iota(jnp.int32, (N, NN), 0)
        a_src = jnp.where((lane & (N - 1)) == ridx, 1.0, 0.0).astype(f32)   # (N, NN)
        a_tgt = jnp.where((lane >> log2n) == ridx, 1.0, 0.0).astype(f32)    # (N, NN)

        src_e = mm(src, a_src)     # (3, NN)  src[:, i]
        tgt_e = mm(tgt, a_tgt)     # (3, NN)  tgt[:, j]
        se_e = mm(se, a_src)       # (E, NN)
        te_e = mm(te, a_tgt)       # (E, NN)

        diff_s = se_e - te_e                       # src_emb[i] - tgt_emb[j]
        diff_o = src_e - tgt_e                     # src[i] - tgt[j]
        d_e = diff_s - (sp - tp)                   # anchor-relative embedding diff
        d_o = diff_o - (sop - top)                 # anchor-relative spatial diff

        # conv_embedding_dis: Conv2DBlock((E, 32, 29), 1)   (BN folded)
        spatial_dis = mm(W('w2e'), relu(mm(W('w1e'), d_e) + Bc('b1e'))) + Bc('b2e')
        # conv_origin_dis: Conv2DBlock((3, 3, 3), 1)
        origin_dis = mm(W('w2o'), relu(mm(W('w1o'), d_o) + Bc('b1o'))) + Bc('b2o')

        # normalized pair differences
        dist_o = jnp.sqrt(jnp.sum(diff_o * diff_o, axis=0, keepdims=True))   # (1, NN)
        dist_s = jnp.sqrt(jnp.sum(diff_s * diff_s, axis=0, keepdims=True))   # (1, NN)
        diff_o_n = diff_o * pl.reciprocal(dist_o + 1e-8, approx=True)
        diff_s_n = diff_s * pl.reciprocal(dist_s + 1e-8, approx=True)

        # sim_mat_conv_spatial[i]: Conv2DBlock((3E+1, 32, 32), 1); channel concat
        # (src_emb | tgt_emb | diff_spatial) fused into one K=3E matmul,
        # dist channel handled via a broadcast column.
        xs = jnp.concatenate([se_e, te_e, diff_s_n], axis=0)                # (3E, NN)
        pre_s = mm(W('w1s'), xs) + Bc('w1s_ds') * dist_s + Bc('b1s')
        sm_sp = mm(W('w2s'), relu(pre_s)) + Bc('b2s')                       # (32, NN)

        # sim_mat_conv_origin[i]: Conv2DBlock((10, 32, 32), 1)
        pre_o = (mm(W('w1g_s'), src_e) + mm(W('w1g_t'), tgt_e)
                 + mm(W('w1g_df'), diff_o_n) + Bc('w1g_ds') * dist_o + Bc('b1g'))
        sm_or = mm(W('w2g'), relu(pre_o)) + Bc('b2g')                       # (32, NN)

        sm = sm_sp * sm_or

        # con_for_fuse on cat(spatial_dis, origin_dis), then sigmoid gate
        gate = jax.nn.sigmoid(mm(W('wf_sp'), spatial_dis)
                              + mm(W('wf_or'), origin_dis) + Bc('bf'))
        sm = gate * sm

        # sim_mat_conv[i]: Conv2DBlock((32, 32, 16), 1)
        sm16 = mm(W('w2c'), relu(mm(W('w1c'), sm) + Bc('b1c'))) + Bc('b2c')  # (16, NN)

        # weights: per-source-point max over targets.  In the lane = j*N + i
        # layout the targets of a source point form the residue class i (mod N);
        # log2(N) circular rolls + max collapse each class, lanes [0, N) then
        # hold max_j sm16[:, i, j].
        m = sm16
        shift = N
        while shift < NN:
            m = jnp.maximum(m, pltpu.roll(m, shift, axis=1))
            shift *= 2
        w16 = m[:, 0:N]                                                     # (16, N)

        # weight_fc[i]: Conv1DBlock((16, 16, 1), 1)  -> one dense (1, N) store
        wlog = mm(W('w2w'), relu(mm(W('w1w'), w16) + Bc('b1w'))) + Bc('b2w')
        wlog_ref[0] = wlog

        # sim_mat_conv2[i]: Conv2DBlock((16, 16, 1), 1), clamp; one 256-lane store
        row = mm(W('w2d'), relu(mm(W('w1d'), sm16) + Bc('b1d'))) + Bc('b2d')
        sim_ref[0] = jnp.clip(row, -20.0, 20.0)

    return kernel


def run_dnet_iter(layout, wslab, bslab, src, tgt, se, te, sp, tp, sop, top):
    B, _, N = src.shape
    E = se.shape[1]
    NN = N * N
    assert N & (N - 1) == 0, "N must be a power of two for the roll-max reduction"
    # TODO(synk): if N grows large, chunk the source axis so the (C, TI*N) working
    # set stays under the per-generation VMEM limit (v7x has 64 MiB).

    wmap, wrows, wwidth, bmap, bcols = layout
    kernel = make_dnet_kernel(layout, N)

    data = [src, tgt, se, te, sp, tp, sop, top]
    data_specs = [
        pl.BlockSpec((1, 3, N), lambda b: (b, 0, 0)),
        pl.BlockSpec((1, 3, N), lambda b: (b, 0, 0)),
        pl.BlockSpec((1, E, N), lambda b: (b, 0, 0)),
        pl.BlockSpec((1, E, N), lambda b: (b, 0, 0)),
        pl.BlockSpec((1, E, 1), lambda b: (b, 0, 0)),
        pl.BlockSpec((1, E, 1), lambda b: (b, 0, 0)),
        pl.BlockSpec((1, 3, 1), lambda b: (b, 0, 0)),
        pl.BlockSpec((1, 3, 1), lambda b: (b, 0, 0)),
    ]
    param_specs = [
        pl.BlockSpec((wrows, wwidth), lambda b: (0, 0)),
        pl.BlockSpec((32, bcols), lambda b: (0, 0)),
    ]

    sim_flat, wlog = pl.pallas_call(
        kernel,
        grid=(B,),
        in_specs=data_specs + param_specs,
        out_specs=[
            pl.BlockSpec((1, 1, NN), lambda b: (b, 0, 0)),
            pl.BlockSpec((1, 1, N), lambda b: (b, 0, 0)),
        ],
        out_shape=[
            jax.ShapeDtypeStruct((B, 1, NN), jnp.float32),
            jax.ShapeDtypeStruct((B, 1, N), jnp.float32),
        ],
        compiler_params=pltpu.CompilerParams(
            dimension_semantics=("parallel",)),
    )(*data, wslab, bslab)

    # lane = j*N + i  ->  reshape gives [b, j, i]; transpose to sim[b, i, j]
    sim = jnp.transpose(sim_flat.reshape(B, N, N), (0, 2, 1))
    return sim, wlog[:, 0, :]


# ----------------------------------------------------------------------------
# Deterministic parameter initialization (eval-mode BN folded into 1x1 conv)
# ----------------------------------------------------------------------------
def _normal(key, shape, scale):
    return (scale * jax.random.normal(key, shape)).astype(jnp.float32)


def make_bnrelu(key, cin, cout):
    k1, k2, k3, k4, k5 = jax.random.split(key, 5)
    W = _normal(k1, (cout, cin), 1.0 / math.sqrt(cin))
    gamma = 1.0 + 0.1 * jax.random.normal(k2, (cout,))
    beta = 0.1 * jax.random.normal(k3, (cout,))
    mean = 0.1 * jax.random.normal(k4, (cout,))
    var = 1.0 + 0.1 * jax.random.uniform(k5, (cout,))
    scale = gamma / jnp.sqrt(var + 1e-5)
    Wf = (W * scale[:, None]).astype(jnp.float32)
    bf = (beta - mean * scale)[:, None].astype(jnp.float32)
    return Wf, bf


def make_conv(key, cin, cout):
    k1, k2 = jax.random.split(key)
    W = _normal(k1, (cout, cin), 1.0 / math.sqrt(cin))
    b = _normal(k2, (cout, 1), 1.0 / math.sqrt(cin))
    return W, b


def init_dnet_params(key, emb_dims, num_iter):
    E = emb_dims
    layout = build_layout(E)
    kit = iter(jax.random.split(key, 64))
    nk = lambda: next(kit)
    # shared (not per-iteration) modules
    W1e, b1e = make_bnrelu(nk(), E, 32)      # conv_embedding_dis
    W2e, b2e = make_conv(nk(), 32, 29)
    W1o, b1o = make_bnrelu(nk(), 3, 3)       # conv_origin_dis
    W2o, b2o = make_conv(nk(), 3, 3)
    Wf, bf = make_conv(nk(), 32, 32)         # con_for_fuse

    slabs = []
    for _ in range(num_iter):
        W1s, b1s = make_bnrelu(nk(), 3 * E + 1, 32)   # sim_mat_conv_spatial[i]
        W2s, b2s = make_conv(nk(), 32, 32)
        W1g, b1g = make_bnrelu(nk(), 10, 32)          # sim_mat_conv_origin[i]
        W2g, b2g = make_conv(nk(), 32, 32)
        W1c, b1c = make_bnrelu(nk(), 32, 32)          # sim_mat_conv[i]
        W2c, b2c = make_conv(nk(), 32, 16)
        W1d, b1d = make_bnrelu(nk(), 16, 16)          # sim_mat_conv2[i]
        W2d, b2d = make_conv(nk(), 16, 1)
        W1w, b1w = make_bnrelu(nk(), 16, 16)          # weight_fc[i]
        W2w, b2w = make_conv(nk(), 16, 1)
        wdict = {
            'w1e': W1e, 'w2e': W2e, 'w1o': W1o, 'w2o': W2o,
            'w1s': W1s[:, :3 * E], 'w2s': W2s,
            'w1g_s': W1g[:, 0:3], 'w1g_t': W1g[:, 3:6], 'w1g_df': W1g[:, 6:9],
            'w2g': W2g,
            'wf_sp': Wf[:, :29], 'wf_or': Wf[:, 29:32],
            'w1c': W1c, 'w2c': W2c, 'w1d': W1d, 'w2d': W2d,
            'w1w': W1w, 'w2w': W2w,
        }
        bdict = {
            'b1e': b1e, 'b2e': b2e, 'b1o': b1o, 'b2o': b2o,
            'b1s': b1s, 'w1s_ds': W1s[:, 3 * E:3 * E + 1], 'b2s': b2s,
            'b1g': b1g, 'w1g_ds': W1g[:, 9:10], 'b2g': b2g,
            'bf': bf, 'b1c': b1c, 'b2c': b2c,
            'b1d': b1d, 'b2d': b2d, 'b1w': b1w, 'b2w': b2w,
        }
        slabs.append(pack_params(layout, wdict, bdict))
    return layout, slabs


# ----------------------------------------------------------------------------
# Glue: SVD head, median-thresholded weights, rigid-transform accumulation
# ----------------------------------------------------------------------------
def mat2euler_zyx_deg(R):
    # equivalent of scipy Rotation.from_matrix(R).as_euler('zyx', degrees=True)
    z = np.arctan2(R[:, 1, 0], R[:, 0, 0])
    y = np.arcsin(np.clip(-R[:, 2, 0], -1.0, 1.0))
    x = np.arctan2(R[:, 2, 1], R[:, 2, 2])
    return np.degrees(np.stack([z, y, x], axis=1)).astype('float32')


def dnet_forward(layout, slabs_per_iter, src, tgt, src_embedding, tgt_embedding,
                 src_sig_score, tgt_sig_score, src_point, tgt_point,
                 src_o_point, tgt_o_point, match_labels, num_iter):
    # TODO(synk): training-only losses (entropy MSE, match NLL, BCE weight loss)
    # are not computed -- this is the eval-mode (self.training == False) forward.
    B, _, N = src.shape
    R = jnp.broadcast_to(jnp.eye(3, dtype=jnp.float32), (B, 3, 3))
    t = jnp.zeros((B, 3), jnp.float32)
    reflect = jnp.diag(jnp.array([1.0, 1.0, -1.0], jnp.float32))
    loss = 0.0

    for it in range(num_iter):
        wslab, bslab = slabs_per_iter[it]
        sim, wlog = run_dnet_iter(layout, wslab, bslab, src, tgt,
                                  src_embedding, tgt_embedding,
                                  src_point, tgt_point, src_o_point, tgt_o_point)
        # correspondence by argmax over target points
        corr_idx = jnp.argmax(sim, axis=-1)                                # (B, N)
        src_corr = jnp.take_along_axis(tgt, corr_idx[:, None, :], axis=2)  # (B, 3, N)

        # weights: sigmoid -> keep >= torch-style (lower) median -> normalize
        w = jax.nn.sigmoid(wlog)                                           # (B, N)
        w_sorted = jnp.sort(w, axis=-1)
        med = w_sorted[:, (N - 1) // 2][:, None]
        w = w * (w >= med).astype(jnp.float32)
        w = w / (jnp.sum(w, axis=-1, keepdims=True) + 1e-8)

        # SVDHead
        srcm = jnp.einsum('bn,bcn->bc', w, src)        # weighted centroid of src
        tgtm = jnp.einsum('bn,bcn->bc', w, src_corr)
        src_c = src - srcm[:, :, None]
        tgt_c = src_corr - tgtm[:, :, None]
        H = jnp.einsum('bcn,bn,bdn->bcd', src_c, w, tgt_c)                 # (B, 3, 3)
        U, S, Vh = jnp.linalg.svd(H)
        V = jnp.swapaxes(Vh, -1, -2)
        r = V @ jnp.swapaxes(U, -1, -2)
        det = jnp.linalg.det(r)
        r_fix = (V @ reflect) @ jnp.swapaxes(U, -1, -2)
        rot = jnp.where((det < 0.0)[:, None, None], r_fix, r)
        trans = -jnp.einsum('bij,bj->bi', rot, srcm) + tgtm                # (B, 3)

        # apply transform & accumulate
        src = jnp.einsum('bij,bjn->bin', rot, src) + trans[:, :, None]
        R = rot @ R
        t = jnp.einsum('bij,bj->bi', rot, t) + trans

    euler_ab = mat2euler_zyx_deg(np.asarray(jax.device_get(R)))
    return R, t, euler_ab, loss, src


# ----------------------------------------------------------------------------
if __name__ == "__main__":
    B, N, E = 2, 16, 64     # emb_dims must be 64 (conv_embedding_dis expects 64 ch)
    NUM_ITER = 2

    key = jax.random.PRNGKey(0)
    kp, kd = jax.random.split(key)
    layout, slabs_per_iter = init_dnet_params(kp, E, NUM_ITER)

    ks = jax.random.split(kd, 8)
    src = jax.random.normal(ks[0], (B, 3, N), jnp.float32)
    tgt = jax.random.normal(ks[1], (B, 3, N), jnp.float32)
    src_embedding = jax.random.normal(ks[2], (B, E, N), jnp.float32)
    tgt_embedding = jax.random.normal(ks[3], (B, E, N), jnp.float32)
    src_point = jax.random.normal(ks[4], (B, E, 1), jnp.float32)
    tgt_point = jax.random.normal(ks[5], (B, E, 1), jnp.float32)
    src_o_point = jax.random.normal(ks[6], (B, 3, 1), jnp.float32)
    tgt_o_point = jax.random.normal(ks[7], (B, 3, 1), jnp.float32)
    src_sig_score = jnp.zeros((B, N), jnp.float32)   # unused in eval-mode forward
    tgt_sig_score = jnp.zeros((B, N), jnp.float32)   # unused in eval-mode forward
    match_labels = jnp.zeros((B, N), jnp.float32)    # unused in eval-mode forward

    R, t, euler_ab, loss, src_out = dnet_forward(
        layout, slabs_per_iter, src, tgt, src_embedding, tgt_embedding,
        src_sig_score, tgt_sig_score, src_point, tgt_point,
        src_o_point, tgt_o_point, match_labels, NUM_ITER)

    jax.block_until_ready((R, t, src_out))
    assert R.shape == (B, 3, 3) and t.shape == (B, 3)
    assert euler_ab.shape == (B, 3) and src_out.shape == (B, 3, N)
    assert np.all(np.isfinite(np.asarray(R))) and np.all(np.isfinite(np.asarray(src_out)))
    print("KERNEL_OK")
</pallas_src>

<mosaic_0001>
module attributes {stable_mosaic.version = 11 : i64} {
  func.func @kernel(%arg0: i32, %arg1: memref<1x3x16xf32, #tpu.memory_space<vmem>>, %arg2: memref<1x3x16xf32, #tpu.memory_space<vmem>>, %arg3: memref<1x64x16xf32, #tpu.memory_space<vmem>>, %arg4: memref<1x64x16xf32, #tpu.memory_space<vmem>>, %arg5: memref<1x64x1xf32, #tpu.memory_space<vmem>>, %arg6: memref<1x64x1xf32, #tpu.memory_space<vmem>>, %arg7: memref<1x3x1xf32, #tpu.memory_space<vmem>>, %arg8: memref<1x3x1xf32, #tpu.memory_space<vmem>>, %arg9: memref<432x192xf32, #tpu.memory_space<vmem>>, %arg10: memref<32x17xf32, #tpu.memory_space<vmem>>, %arg11: memref<1x1x256xf32, #tpu.memory_space<vmem>>, %arg12: memref<1x1x16xf32, #tpu.memory_space<vmem>>) attributes {dimension_semantics = [#tpu.dimension_semantics<parallel>], iteration_bounds = array<i64: 2>, scalar_prefetch = 0 : i64, scratch_operands = 0 : i64, tpu.core_type = #tpu.core_type<tc>, window_params = [{transform_indices = @transform_0, window_bounds = array<i64: 1, 3, 16>}, {transform_indices = @transform_1, window_bounds = array<i64: 1, 3, 16>}, {transform_indices = @transform_2, window_bounds = array<i64: 1, 64, 16>}, {transform_indices = @transform_3, window_bounds = array<i64: 1, 64, 16>}, {transform_indices = @transform_4, window_bounds = array<i64: 1, 64, 1>}, {transform_indices = @transform_5, window_bounds = array<i64: 1, 64, 1>}, {transform_indices = @transform_6, window_bounds = array<i64: 1, 3, 1>}, {transform_indices = @transform_7, window_bounds = array<i64: 1, 3, 1>}, {pipeline_mode = #tpu.pipeline_mode<synchronous>, transform_indices = @transform_8, window_bounds = array<i64: 432, 192>}, {pipeline_mode = #tpu.pipeline_mode<synchronous>, transform_indices = @transform_9, window_bounds = array<i64: 32, 17>}, {transform_indices = @transform_10, window_bounds = array<i64: 1, 1, 256>}, {transform_indices = @transform_11, window_bounds = array<i64: 1, 1, 16>}]} {
    %c0 = arith.constant 0 : index
    %c0_0 = arith.constant 0 : index
    %c0_1 = arith.constant 0 : index
    %0 = vector.load %arg1[%c0, %c0_0, %c0_1] : memref<1x3x16xf32, #tpu.memory_space<vmem>>, vector<1x3x16xf32>
    %1 = vector.shape_cast %0 : vector<1x3x16xf32> to vector<3x16xf32>
    %c0_2 = arith.constant 0 : index
    %c0_3 = arith.constant 0 : index
    %c0_4 = arith.constant 0 : index
    %2 = vector.load %arg2[%c0_2, %c0_3, %c0_4] : memref<1x3x16xf32, #tpu.memory_space<vmem>>, vector<1x3x16xf32>
    %3 = vector.shape_cast %2 : vector<1x3x16xf32> to vector<3x16xf32>
    %c0_5 = arith.constant 0 : index
    %c0_6 = arith.constant 0 : index
    %c0_7 = arith.constant 0 : index
    %4 = vector.load %arg3[%c0_5, %c0_6, %c0_7] : memref<1x64x16xf32, #tpu.memory_space<vmem>>, vector<1x64x16xf32>
    %5 = vector.shape_cast %4 : vector<1x64x16xf32> to vector<64x16xf32>
    %c0_8 = arith.constant 0 : index
    %c0_9 = arith.constant 0 : index
    %c0_10 = arith.constant 0 : index
    %6 = vector.load %arg4[%c0_8, %c0_9, %c0_10] : memref<1x64x16xf32, #tpu.memory_space<vmem>>, vector<1x64x16xf32>
    %7 = vector.shape_cast %6 : vector<1x64x16xf32> to vector<64x16xf32>
    %c0_11 = arith.constant 0 : index
    %c0_12 = arith.constant 0 : index
    %c0_13 = arith.constant 0 : index
    %8 = vector.load %arg5[%c0_11, %c0_12, %c0_13] : memref<1x64x1xf32, #tpu.memory_space<vmem>>, vector<1x64x1xf32>
    %9 = vector.shape_cast %8 : vector<1x64x1xf32> to vector<64x1xf32>
    %c0_14 = arith.constant 0 : index
    %c0_15 = arith.constant 0 : index
    %c0_16 = arith.constant 0 : index
    %10 = vector.load %arg6[%c0_14, %c0_15, %c0_16] : memref<1x64x1xf32, #tpu.memory_space<vmem>>, vector<1x64x1xf32>
    %11 = vector.shape_cast %10 : vector<1x64x1xf32> to vector<64x1xf32>
    %c0_17 = arith.constant 0 : index
    %c0_18 = arith.constant 0 : index
    %c0_19 = arith.constant 0 : index
    %12 = vector.load %arg7[%c0_17, %c0_18, %c0_19] : memref<1x3x1xf32, #tpu.memory_space<vmem>>, vector<1x3x1xf32>
    %13 = vector.shape_cast %12 : vector<1x3x1xf32> to vector<3x1xf32>
    %c0_20 = arith.constant 0 : index
    %c0_21 = arith.constant 0 : index
    %c0_22 = arith.constant 0 : index
    %14 = vector.load %arg8[%c0_20, %c0_21, %c0_22] : memref<1x3x1xf32, #tpu.memory_space<vmem>>, vector<1x3x1xf32>
    %15 = vector.shape_cast %14 : vector<1x3x1xf32> to vector<3x1xf32>
    %16 = tpu.iota {dimensions = array<i32: 1>} : vector<16x256xi32>
    %17 = tpu.iota {dimensions = array<i32: 0>} : vector<16x256xi32>
    %c15_i32 = arith.constant 15 : i32
    %18 = vector.broadcast %c15_i32 : i32 to vector<16x256xi32>
    %19 = arith.andi %16, %18 : vector<16x256xi32>
    %20 = arith.cmpi eq, %19, %17 : vector<16x256xi32>
    %cst = arith.constant 1.000000e+00 : f32
    %cst_23 = arith.constant 0.000000e+00 : f32
    %21 = vector.broadcast %cst : f32 to vector<16x256xf32>
    %22 = vector.broadcast %cst_23 : f32 to vector<16x256xf32>
    %23 = arith.select %20, %21, %22 : vector<16x256xi1>, vector<16x256xf32>
    %c4_i32 = arith.constant 4 : i32
    %24 = vector.broadcast %c4_i32 : i32 to vector<16x256xi32>
    %25 = arith.shrsi %16, %24 : vector<16x256xi32>
    %26 = arith.cmpi eq, %25, %17 : vector<16x256xi32>
    %cst_24 = arith.constant 1.000000e+00 : f32
    %cst_25 = arith.constant 0.000000e+00 : f32
    %27 = vector.broadcast %cst_24 : f32 to vector<16x256xf32>
    %28 = vector.broadcast %cst_25 : f32 to vector<16x256xf32>
    %29 = arith.select %26, %27, %28 : vector<16x256xi1>, vector<16x256xf32>
    %cst_26 = arith.constant dense<0.000000e+00> : vector<3x256xf32>
    %30 = tpu.matmul %1, %23, %cst_26 {dimension_numbers = #tpu.dot_dimension_numbers<[1], [0], [0], [1], [0, 0, 1, 1], [], []>} : vector<3x16xf32>, vector<16x256xf32>, vector<3x256xf32> -> vector<3x256xf32>
    %cst_27 = arith.constant dense<0.000000e+00> : vector<3x256xf32>
    %31 = tpu.matmul %3, %29, %cst_27 {dimension_numbers = #tpu.dot_dimension_numbers<[1], [0], [0], [1], [0, 0, 1, 1], [], []>} : vector<3x16xf32>, vector<16x256xf32>, vector<3x256xf32> -> vector<3x256xf32>
    %cst_28 = arith.constant dense<0.000000e+00> : vector<64x256xf32>
    %32 = tpu.matmul %5, %23, %cst_28 {dimension_numbers = #tpu.dot_dimension_numbers<[1], [0], [0], [1], [0, 0, 1, 1], [], []>} : vector<64x16xf32>, vector<16x256xf32>, vector<64x256xf32> -> vector<64x256xf32>
    %cst_29 = arith.constant dense<0.000000e+00> : vector<64x256xf32>
    %33 = tpu.matmul %7, %29, %cst_29 {dimension_numbers = #tpu.dot_dimension_numbers<[1], [0], [0], [1], [0, 0, 1, 1], [], []>} : vector<64x16xf32>, vector<16x256xf32>, vector<64x256xf32> -> vector<64x256xf32>
    %34 = arith.subf %32, %33 : vector<64x256xf32>
    %35 = arith.subf %30, %31 : vector<3x256xf32>
    %36 = arith.subf %9, %11 : vector<64x1xf32>
    %37 = vector.broadcast %36 : vector<64x1xf32> to vector<64x256xf32>
    %38 = arith.subf %34, %37 : vector<64x256xf32>
    %39 = arith.subf %13, %15 : vector<3x1xf32>
    %40 = vector.broadcast %39 : vector<3x1xf32> to vector<3x256xf32>
    %41 = arith.subf %35, %40 : vector<3x256xf32>
    %c32 = arith.constant 32 : index
    %c0_30 = arith.constant 0 : index
    %42 = vector.load %arg9[%c32, %c0_30] : memref<432x192xf32, #tpu.memory_space<vmem>>, vector<29x32xf32>
    %c0_31 = arith.constant 0 : index
    %c0_32 = arith.constant 0 : index
    %43 = vector.load %arg9[%c0_31, %c0_32] : memref<432x192xf32, #tpu.memory_space<vmem>>, vector<32x64xf32>
    %cst_33 = arith.constant dense<0.000000e+00> : vector<32x256xf32>
    %44 = tpu.matmul %43, %38, %cst_33 {dimension_numbers = #tpu.dot_dimension_numbers<[1], [0], [0], [1], [0, 0, 1, 1], [], []>} : vector<32x64xf32>, vector<64x256xf32>, vector<32x256xf32> -> vector<32x256xf32>
    %c0_34 = arith.constant 0 : index
    %c0_35 = arith.constant 0 : index
    %45 = vector.load %arg10[%c0_34, %c0_35] : memref<32x17xf32, #tpu.memory_space<vmem>>, vector<32x1xf32>
    %46 = vector.broadcast %45 : vector<32x1xf32> to vector<32x256xf32>
    %47 = arith.addf %44, %46 : vector<32x256xf32>
    %cst_36 = arith.constant 0.000000e+00 : f32
    %48 = vector.broadcast %cst_36 : f32 to vector<32x256xf32>
    %49 = arith.maximumf %47, %48 : vector<32x256xf32>
    %cst_37 = arith.constant dense<0.000000e+00> : vector<29x256xf32>
    %50 = tpu.matmul %42, %49, %cst_37 {dimension_numbers = #tpu.dot_dimension_numbers<[1], [0], [0], [1], [0, 0, 1, 1], [], []>} : vector<29x32xf32>, vector<32x256xf32>, vector<29x256xf32> -> vector<29x256xf32>
    %c0_38 = arith.constant 0 : index
    %c1 = arith.constant 1 : index
    %51 = vector.load %arg10[%c0_38, %c1] : memref<32x17xf32, #tpu.memory_space<vmem>>, vector<29x1xf32>
    %52 = vector.broadcast %51 : vector<29x1xf32> to vector<29x256xf32>
    %53 = arith.addf %50, %52 : vector<29x256xf32>
    %c72 = arith.constant 72 : index
    %c0_39 = arith.constant 0 : index
    %54 = vector.load %arg9[%c72, %c0_39] : memref<432x192xf32, #tpu.memory_space<vmem>>, vector<3x3xf32>
    %c64 = arith.constant 64 : index
    %c0_40 = arith.constant 0 : index
    %55 = vector.load %arg9[%c64, %c0_40] : memref<432x192xf32, #tpu.memory_space<vmem>>, vector<3x3xf32>
    %cst_41 = arith.constant dense<0.000000e+00> : vector<3x256xf32>
    %56 = tpu.matmul %55, %41, %cst_41 {dimension_numbers = #tpu.dot_dimension_numbers<[1], [0], [0], [1], [0, 0, 1, 1], [], []>} : vector<3x3xf32>, vector<3x256xf32>, vector<3x256xf32> -> vector<3x256xf32>
    %c0_42 = arith.constant 0 : index
    %c2 = arith.constant 2 : index
    %57 = vector.load %arg10[%c0_42, %c2] : memref<32x17xf32, #tpu.memory_space<vmem>>, vector<3x1xf32>
    %58 = vector.broadcast %57 : vector<3x1xf32> to vector<3x256xf32>
    %59 = arith.addf %56, %58 : vector<3x256xf32>
    %cst_43 = arith.constant 0.000000e+00 : f32
    %60 = vector.broadcast %cst_43 : f32 to vector<3x256xf32>
    %61 = arith.maximumf %59, %60 : vector<3x256xf32>
    %cst_44 = arith.constant dense<0.000000e+00> : vector<3x256xf32>
    %62 = tpu.matmul %54, %61, %cst_44 {dimension_numbers = #tpu.dot_dimension_numbers<[1], [0], [0], [1], [0, 0, 1, 1], [], []>} : vector<3x3xf32>, vector<3x256xf32>, vector<3x256xf32> -> vector<3x256xf32>
    %c0_45 = arith.constant 0 : index
    %c3 = arith.constant 3 : index
    %63 = vector.load %arg10[%c0_45, %c3] : memref<32x17xf32, #tpu.memory_space<vmem>>, vector<3x1xf32>
    %64 = vector.broadcast %63 : vector<3x1xf32> to vector<3x256xf32>
    %65 = arith.addf %62, %64 : vector<3x256xf32>
    %66 = arith.mulf %35, %35 : vector<3x256xf32>
    %cst_46 = arith.constant dense<0.000000e+00> : vector<256xf32>
    %67 = vector.multi_reduction <add>, %66, %cst_46 [0] : vector<3x256xf32> to vector<256xf32>
    %68 = vector.shape_cast %67 : vector<256xf32> to vector<1x256xf32>
    %69 = math.sqrt %68 : vector<1x256xf32>
    %70 = arith.mulf %34, %34 : vector<64x256xf32>
    %cst_47 = arith.constant dense<0.000000e+00> : vector<256xf32>
    %71 = vector.multi_reduction <add>, %70, %cst_47 [0] : vector<64x256xf32> to vector<256xf32>
    %72 = vector.shape_cast %71 : vector<256xf32> to vector<1x256xf32>
    %73 = math.sqrt %72 : vector<1x256xf32>
    %cst_48 = arith.constant 9.99999993E-9 : f32
    %74 = vector.broadcast %cst_48 : f32 to vector<1x256xf32>
    %75 = arith.addf %69, %74 : vector<1x256xf32>
    %76 = tpu.reciprocal %75 {approx = true} : vector<1x256xf32> -> vector<1x256xf32>
    %77 = vector.broadcast %76 : vector<1x256xf32> to vector<3x256xf32>
    %78 = arith.mulf %35, %77 : vector<3x256xf32>
    %cst_49 = arith.constant 9.99999993E-9 : f32
    %79 = vector.broadcast %cst_49 : f32 to vector<1x256xf32>
    %80 = arith.addf %73, %79 : vector<1x256xf32>
    %81 = tpu.reciprocal %80 {approx = true} : vector<1x256xf32> -> vector<1x256xf32>
    %82 = vector.broadcast %81 : vector<1x256xf32> to vector<64x256xf32>
    %83 = arith.mulf %34, %82 : vector<64x256xf32>
    %84 = tpu.concatenate %32, %33, %83 in 0 : vector<64x256xf32>, vector<64x256xf32>, vector<64x256xf32> -> vector<192x256xf32>
    %c80 = arith.constant 80 : index
    %c0_50 = arith.constant 0 : index
    %85 = vector.load %arg9[%c80, %c0_50] : memref<432x192xf32, #tpu.memory_space<vmem>>, vector<32x192xf32>
    %cst_51 = arith.constant dense<0.000000e+00> : vector<32x256xf32>
    %86 = tpu.matmul %85, %84, %cst_51 {dimension_numbers = #tpu.dot_dimension_numbers<[1], [0], [0], [1], [0, 0, 1, 1], [], []>} : vector<32x192xf32>, vector<192x256xf32>, vector<32x256xf32> -> vector<32x256xf32>
    %c0_52 = arith.constant 0 : index
    %c5 = arith.constant 5 : index
    %87 = vector.load %arg10[%c0_52, %c5] : memref<32x17xf32, #tpu.memory_space<vmem>>, vector<32x1xf32>
    %88 = vector.broadcast %87 : vector<32x1xf32> to vector<32x256xf32>
    %89 = vector.broadcast %73 : vector<1x256xf32> to vector<32x256xf32>
    %90 = arith.mulf %88, %89 : vector<32x256xf32>
    %91 = arith.addf %86, %90 : vector<32x256xf32>
    %c0_53 = arith.constant 0 : index
    %c4 = arith.constant 4 : index
    %92 = vector.load %arg10[%c0_53, %c4] : memref<32x17xf32, #tpu.memory_space<vmem>>, vector<32x1xf32>
    %93 = vector.broadcast %92 : vector<32x1xf32> to vector<32x256xf32>
    %94 = arith.addf %91, %93 : vector<32x256xf32>
    %c112 = arith.constant 112 : index
    %c0_54 = arith.constant 0 : index
    %95 = vector.load %arg9[%c112, %c0_54] : memref<432x192xf32, #tpu.memory_space<vmem>>, vector<32x32xf32>
    %cst_55 = arith.constant 0.000000e+00 : f32
    %96 = vector.broadcast %cst_55 : f32 to vector<32x256xf32>
    %97 = arith.maximumf %94, %96 : vector<32x256xf32>
    %cst_56 = arith.constant dense<0.000000e+00> : vector<32x256xf32>
    %98 = tpu.matmul %95, %97, %cst_56 {dimension_numbers = #tpu.dot_dimension_numbers<[1], [0], [0], [1], [0, 0, 1, 1], [], []>} : vector<32x32xf32>, vector<32x256xf32>, vector<32x256xf32> -> vector<32x256xf32>
    %c0_57 = arith.constant 0 : index
    %c6 = arith.constant 6 : index
    %99 = vector.load %arg10[%c0_57, %c6] : memref<32x17xf32, #tpu.memory_space<vmem>>, vector<32x1xf32>
    %100 = vector.broadcast %99 : vector<32x1xf32> to vector<32x256xf32>
    %101 = arith.addf %98, %100 : vector<32x256xf32>
    %c144 = arith.constant 144 : index
    %c0_58 = arith.constant 0 : index
    %102 = vector.load %arg9[%c144, %c0_58] : memref<432x192xf32, #tpu.memory_space<vmem>>, vector<32x3xf32>
    %cst_59 = arith.constant dense<0.000000e+00> : vector<32x256xf32>
    %103 = tpu.matmul %102, %30, %cst_59 {dimension_numbers = #tpu.dot_dimension_numbers<[1], [0], [0], [1], [0, 0, 1, 1], [], []>} : vector<32x3xf32>, vector<3x256xf32>, vector<32x256xf32> -> vector<32x256xf32>
    %c176 = arith.constant 176 : index
    %c0_60 = arith.constant 0 : index
    %104 = vector.load %arg9[%c176, %c0_60] : memref<432x192xf32, #tpu.memory_space<vmem>>, vector<32x3xf32>
    %cst_61 = arith.constant dense<0.000000e+00> : vector<32x256xf32>
    %105 = tpu.matmul %104, %31, %cst_61 {dimension_numbers = #tpu.dot_dimension_numbers<[1], [0], [0], [1], [0, 0, 1, 1], [], []>} : vector<32x3xf32>, vector<3x256xf32>, vector<32x256xf32> -> vector<32x256xf32>
    %106 = arith.addf %103, %105 : vector<32x256xf32>
    %c208 = arith.constant 208 : index
    %c0_62 = arith.constant 0 : index
    %107 = vector.load %arg9[%c208, %c0_62] : memref<432x192xf32, #tpu.memory_space<vmem>>, vector<32x3xf32>
    %cst_63 = arith.constant dense<0.000000e+00> : vector<32x256xf32>
    %108 = tpu.matmul %107, %78, %cst_63 {dimension_numbers = #tpu.dot_dimension_numbers<[1], [0], [0], [1], [0, 0, 1, 1], [], []>} : vector<32x3xf32>, vector<3x256xf32>, vector<32x256xf32> -> vector<32x256xf32>
    %109 = arith.addf %106, %108 : vector<32x256xf32>
    %c0_64 = arith.constant 0 : index
    %c8 = arith.constant 8 : index
    %110 = vector.load %arg10[%c0_64, %c8] : memref<32x17xf32, #tpu.memory_space<vmem>>, vector<32x1xf32>
    %111 = vector.broadcast %110 : vector<32x1xf32> to vector<32x256xf32>
    %112 = vector.broadcast %69 : vector<1x256xf32> to vector<32x256xf32>
    %113 = arith.mulf %111, %112 : vector<32x256xf32>
    %114 = arith.addf %109, %113 : vector<32x256xf32>
    %c0_65 = arith.constant 0 : index
    %c7 = arith.constant 7 : index
    %115 = vector.load %arg10[%c0_65, %c7] : memref<32x17xf32, #tpu.memory_space<vmem>>, vector<32x1xf32>
    %116 = vector.broadcast %115 : vector<32x1xf32> to vector<32x256xf32>
    %117 = arith.addf %114, %116 : vector<32x256xf32>
    %c240 = arith.constant 240 : index
    %c0_66 = arith.constant 0 : index
    %118 = vector.load %arg9[%c240, %c0_66] : memref<432x192xf32, #tpu.memory_space<vmem>>, vector<32x32xf32>
    %cst_67 = arith.constant 0.000000e+00 : f32
    %119 = vector.broadcast %cst_67 : f32 to vector<32x256xf32>
    %120 = arith.maximumf %117, %119 : vector<32x256xf32>
    %cst_68 = arith.constant dense<0.000000e+00> : vector<32x256xf32>
    %121 = tpu.matmul %118, %120, %cst_68 {dimension_numbers = #tpu.dot_dimension_numbers<[1], [0], [0], [1], [0, 0, 1, 1], [], []>} : vector<32x32xf32>, vector<32x256xf32>, vector<32x256xf32> -> vector<32x256xf32>
    %c0_69 = arith.constant 0 : index
    %c9 = arith.constant 9 : index
    %122 = vector.load %arg10[%c0_69, %c9] : memref<32x17xf32, #tpu.memory_space<vmem>>, vector<32x1xf32>
    %123 = vector.broadcast %122 : vector<32x1xf32> to vector<32x256xf32>
    %124 = arith.addf %121, %123 : vector<32x256xf32>
    %125 = arith.mulf %101, %124 : vector<32x256xf32>
    %c272 = arith.constant 272 : index
    %c0_70 = arith.constant 0 : index
    %126 = vector.load %arg9[%c272, %c0_70] : memref<432x192xf32, #tpu.memory_space<vmem>>, vector<32x29xf32>
    %cst_71 = arith.constant dense<0.000000e+00> : vector<32x256xf32>
    %127 = tpu.matmul %126, %53, %cst_71 {dimension_numbers = #tpu.dot_dimension_numbers<[1], [0], [0], [1], [0, 0, 1, 1], [], []>} : vector<32x29xf32>, vector<29x256xf32>, vector<32x256xf32> -> vector<32x256xf32>
    %c304 = arith.constant 304 : index
    %c0_72 = arith.constant 0 : index
    %128 = vector.load %arg9[%c304, %c0_72] : memref<432x192xf32, #tpu.memory_space<vmem>>, vector<32x3xf32>
    %cst_73 = arith.constant dense<0.000000e+00> : vector<32x256xf32>
    %129 = tpu.matmul %128, %65, %cst_73 {dimension_numbers = #tpu.dot_dimension_numbers<[1], [0], [0], [1], [0, 0, 1, 1], [], []>} : vector<32x3xf32>, vector<3x256xf32>, vector<32x256xf32> -> vector<32x256xf32>
    %130 = arith.addf %127, %129 : vector<32x256xf32>
    %c0_74 = arith.constant 0 : index
    %c10 = arith.constant 10 : index
    %131 = vector.load %arg10[%c0_74, %c10] : memref<32x17xf32, #tpu.memory_space<vmem>>, vector<32x1xf32>
    %132 = vector.broadcast %131 : vector<32x1xf32> to vector<32x256xf32>
    %133 = arith.addf %130, %132 : vector<32x256xf32>
    %134 = arith.negf %133 : vector<32x256xf32>
    %135 = math.exp %134 : vector<32x256xf32>
    %cst_75 = arith.constant 1.000000e+00 : f32
    %136 = vector.broadcast %cst_75 : f32 to vector<32x256xf32>
    %137 = arith.addf %136, %135 : vector<32x256xf32>
    %138 = arith.divf %136, %137 : vector<32x256xf32>
    %139 = arith.mulf %138, %125 : vector<32x256xf32>
    %c368 = arith.constant 368 : index
    %c0_76 = arith.constant 0 : index
    %140 = vector.load %arg9[%c368, %c0_76] : memref<432x192xf32, #tpu.memory_space<vmem>>, vector<16x32xf32>
    %c336 = arith.constant 336 : index
    %c0_77 = arith.constant 0 : index
    %141 = vector.load %arg9[%c336, %c0_77] : memref<432x192xf32, #tpu.memory_space<vmem>>, vector<32x32xf32>
    %cst_78 = arith.constant dense<0.000000e+00> : vector<32x256xf32>
    %142 = tpu.matmul %141, %139, %cst_78 {dimension_numbers = #tpu.dot_dimension_numbers<[1], [0], [0], [1], [0, 0, 1, 1], [], []>} : vector<32x32xf32>, vector<32x256xf32>, vector<32x256xf32> -> vector<32x256xf32>
    %c0_79 = arith.constant 0 : index
    %c11 = arith.constant 11 : index
    %143 = vector.load %arg10[%c0_79, %c11] : memref<32x17xf32, #tpu.memory_space<vmem>>, vector<32x1xf32>
    %144 = vector.broadcast %143 : vector<32x1xf32> to vector<32x256xf32>
    %145 = arith.addf %142, %144 : vector<32x256xf32>
    %cst_80 = arith.constant 0.000000e+00 : f32
    %146 = vector.broadcast %cst_80 : f32 to vector<32x256xf32>
    %147 = arith.maximumf %145, %146 : vector<32x256xf32>
    %cst_81 = arith.constant dense<0.000000e+00> : vector<16x256xf32>
    %148 = tpu.matmul %140, %147, %cst_81 {dimension_numbers = #tpu.dot_dimension_numbers<[1], [0], [0], [1], [0, 0, 1, 1], [], []>} : vector<16x32xf32>, vector<32x256xf32>, vector<16x256xf32> -> vector<16x256xf32>
    %c0_82 = arith.constant 0 : index
    %c12 = arith.constant 12 : index
    %149 = vector.load %arg10[%c0_82, %c12] : memref<32x17xf32, #tpu.memory_space<vmem>>, vector<16x1xf32>
    %150 = vector.broadcast %149 : vector<16x1xf32> to vector<16x256xf32>
    %151 = arith.addf %148, %150 : vector<16x256xf32>
    %c16_i32 = arith.constant 16 : i32
    %152 = tpu.dynamic_rotate %151 by %c16_i32 dim 1 : vector<16x256xf32>, i32 -> vector<16x256xf32>
    %153 = arith.maximumf %151, %152 : vector<16x256xf32>
    %c32_i32 = arith.constant 32 : i32
    %154 = tpu.dynamic_rotate %153 by %c32_i32 dim 1 : vector<16x256xf32>, i32 -> vector<16x256xf32>
    %155 = arith.maximumf %153, %154 : vector<16x256xf32>
    %c64_i32 = arith.constant 64 : i32
    %156 = tpu.dynamic_rotate %155 by %c64_i32 dim 1 : vector<16x256xf32>, i32 -> vector<16x256xf32>
    %157 = arith.maximumf %155, %156 : vector<16x256xf32>
    %c128_i32 = arith.constant 128 : i32
    %158 = tpu.dynamic_rotate %157 by %c128_i32 dim 1 : vector<16x256xf32>, i32 -> vector<16x256xf32>
    %159 = arith.maximumf %157, %158 : vector<16x256xf32>
    %160 = vector.extract_strided_slice %159 {offsets = [0, 0], sizes = [16, 16], strides = [1, 1]} : vector<16x256xf32> to vector<16x16xf32>
    %c424 = arith.constant 424 : index
    %c0_83 = arith.constant 0 : index
    %161 = vector.load %arg9[%c424, %c0_83] : memref<432x192xf32, #tpu.memory_space<vmem>>, vector<1x16xf32>
    %c408 = arith.constant 408 : index
    %c0_84 = arith.constant 0 : index
    %162 = vector.load %arg9[%c408, %c0_84] : memref<432x192xf32, #tpu.memory_space<vmem>>, vector<16x16xf32>
    %cst_85 = arith.constant dense<0.000000e+00> : vector<16x16xf32>
    %163 = tpu.matmul %162, %160, %cst_85 {dimension_numbers = #tpu.dot_dimension_numbers<[1], [0], [0], [1], [0, 0, 1, 1], [], []>} : vector<16x16xf32>, vector<16x16xf32>, vector<16x16xf32> -> vector<16x16xf32>
    %c0_86 = arith.constant 0 : index
    %c15 = arith.constant 15 : index
    %164 = vector.load %arg10[%c0_86, %c15] : memref<32x17xf32, #tpu.memory_space<vmem>>, vector<16x1xf32>
    %165 = vector.broadcast %164 : vector<16x1xf32> to vector<16x16xf32>
    %166 = arith.addf %163, %165 : vector<16x16xf32>
    %cst_87 = arith.constant 0.000000e+00 : f32
    %167 = vector.broadcast %cst_87 : f32 to vector<16x16xf32>
    %168 = arith.maximumf %166, %167 : vector<16x16xf32>
    %cst_88 = arith.constant dense<0.000000e+00> : vector<1x16xf32>
    %169 = tpu.matmul %161, %168, %cst_88 {dimension_numbers = #tpu.dot_dimension_numbers<[1], [0], [0], [1], [0, 0, 1, 1], [], []>} : vector<1x16xf32>, vector<16x16xf32>, vector<1x16xf32> -> vector<1x16xf32>
    %c0_89 = arith.constant 0 : index
    %c16 = arith.constant 16 : index
    %170 = vector.load %arg10[%c0_89, %c16] : memref<32x17xf32, #tpu.memory_space<vmem>>, vector<1x1xf32>
    %171 = vector.broadcast %170 : vector<1x1xf32> to vector<1x16xf32>
    %172 = arith.addf %169, %171 : vector<1x16xf32>
    %c0_90 = arith.constant 0 : index
    %c0_91 = arith.constant 0 : index
    %c0_92 = arith.constant 0 : index
    %173 = vector.load %arg12[%c0_90, %c0_91, %c0_92] : memref<1x1x16xf32, #tpu.memory_space<vmem>>, vector<1x1x16xf32>
    %174 = vector.shape_cast %173 : vector<1x1x16xf32> to vector<1x16xf32>
    %175 = vector.shape_cast %172 : vector<1x16xf32> to vector<1x1x16xf32>
    tpu.vector_store %arg12[%c0_90, %c0_91, %c0_92], %175 {strides = array<i32>} : memref<1x1x16xf32, #tpu.memory_space<vmem>>, vector<1x1x16xf32>,
    %c400 = arith.constant 400 : index
    %c0_93 = arith.constant 0 : index
    %176 = vector.load %arg9[%c400, %c0_93] : memref<432x192xf32, #tpu.memory_space<vmem>>, vector<1x16xf32>
    %c384 = arith.constant 384 : index
    %c0_94 = arith.constant 0 : index
    %177 = vector.load %arg9[%c384, %c0_94] : memref<432x192xf32, #tpu.memory_space<vmem>>, vector<16x16xf32>
    %cst_95 = arith.constant dense<0.000000e+00> : vector<16x256xf32>
    %178 = tpu.matmul %177, %151, %cst_95 {dimension_numbers = #tpu.dot_dimension_numbers<[1], [0], [0], [1], [0, 0, 1, 1], [], []>} : vector<16x16xf32>, vector<16x256xf32>, vector<16x256xf32> -> vector<16x256xf32>
    %c0_96 = arith.constant 0 : index
    %c13 = arith.constant 13 : index
    %179 = vector.load %arg10[%c0_96, %c13] : memref<32x17xf32, #tpu.memory_space<vmem>>, vector<16x1xf32>
    %180 = vector.broadcast %179 : vector<16x1xf32> to vector<16x256xf32>
    %181 = arith.addf %178, %180 : vector<16x256xf32>
    %cst_97 = arith.constant 0.000000e+00 : f32
    %182 = vector.broadcast %cst_97 : f32 to vector<16x256xf32>
    %183 = arith.maximumf %181, %182 : vector<16x256xf32>
    %cst_98 = arith.constant dense<0.000000e+00> : vector<1x256xf32>
    %184 = tpu.matmul %176, %183, %cst_98 {dimension_numbers = #tpu.dot_dimension_numbers<[1], [0], [0], [1], [0, 0, 1, 1], [], []>} : vector<1x16xf32>, vector<16x256xf32>, vector<1x256xf32> -> vector<1x256xf32>
    %c0_99 = arith.constant 0 : index
    %c14 = arith.constant 14 : index
    %185 = vector.load %arg10[%c0_99, %c14] : memref<32x17xf32, #tpu.memory_space<vmem>>, vector<1x1xf32>
    %186 = vector.broadcast %185 : vector<1x1xf32> to vector<1x256xf32>
    %187 = arith.addf %184, %186 : vector<1x256xf32>
    %cst_100 = arith.constant -2.000000e+01 : f32
    %cst_101 = arith.constant 2.000000e+01 : f32
    %188 = vector.broadcast %cst_100 : f32 to vector<1x256xf32>
    %189 = arith.maximumf %188, %187 : vector<1x256xf32>
    %190 = vector.broadcast %cst_101 : f32 to vector<1x256xf32>
    %191 = arith.minimumf %190, %189 : vector<1x256xf32>
    %c0_102 = arith.constant 0 : index
    %c0_103 = arith.constant 0 : index
    %c0_104 = arith.constant 0 : index
    %192 = vector.load %arg11[%c0_102, %c0_103, %c0_104] : memref<1x1x256xf32, #tpu.memory_space<vmem>>, vector<1x1x256xf32>
    %193 = vector.shape_cast %192 : vector<1x1x256xf32> to vector<1x256xf32>
    %194 = vector.shape_cast %191 : vector<1x256xf32> to vector<1x1x256xf32>
    tpu.vector_store %arg11[%c0_102, %c0_103, %c0_104], %194 {strides = array<i32>} : memref<1x1x256xf32, #tpu.memory_space<vmem>>, vector<1x1x256xf32>,
    return
  }
  func.func @transform_0(%arg0: i32) -> (i32, i32, i32) {
    %c0_i32 = arith.constant 0 : i32
    %c0_i32_0 = arith.constant 0 : i32
    %c0_i32_1 = arith.constant 0 : i32
    return %arg0, %c0_i32, %c0_i32_0 : i32, i32, i32
  }
  func.func @transform_1(%arg0: i32) -> (i32, i32, i32) {
    %c0_i32 = arith.constant 0 : i32
    %c0_i32_0 = arith.constant 0 : i32
    %c0_i32_1 = arith.constant 0 : i32
    return %arg0, %c0_i32, %c0_i32_0 : i32, i32, i32
  }
  func.func @transform_2(%arg0: i32) -> (i32, i32, i32) {
    %c0_i32 = arith.constant 0 : i32
    %c0_i32_0 = arith.constant 0 : i32
    %c0_i32_1 = arith.constant 0 : i32
    return %arg0, %c0_i32, %c0_i32_0 : i32, i32, i32
  }
  func.func @transform_3(%arg0: i32) -> (i32, i32, i32) {
    %c0_i32 = arith.constant 0 : i32
    %c0_i32_0 = arith.constant 0 : i32
    %c0_i32_1 = arith.constant 0 : i32
    return %arg0, %c0_i32, %c0_i32_0 : i32, i32, i32
  }
  func.func @transform_4(%arg0: i32) -> (i32, i32, i32) {
    %c0_i32 = arith.constant 0 : i32
    %c0_i32_0 = arith.constant 0 : i32
    %c0_i32_1 = arith.constant 0 : i32
    return %arg0, %c0_i32, %c0_i32_0 : i32, i32, i32
  }
  func.func @transform_5(%arg0: i32) -> (i32, i32, i32) {
    %c0_i32 = arith.constant 0 : i32
    %c0_i32_0 = arith.constant 0 : i32
    %c0_i32_1 = arith.constant 0 : i32
    return %arg0, %c0_i32, %c0_i32_0 : i32, i32, i32
  }
  func.func @transform_6(%arg0: i32) -> (i32, i32, i32) {
    %c0_i32 = arith.constant 0 : i32
    %c0_i32_0 = arith.constant 0 : i32
    %c0_i32_1 = arith.constant 0 : i32
    return %arg0, %c0_i32, %c0_i32_0 : i32, i32, i32
  }
  func.func @transform_7(%arg0: i32) -> (i32, i32, i32) {
    %c0_i32 = arith.constant 0 : i32
    %c0_i32_0 = arith.constant 0 : i32
    %c0_i32_1 = arith.constant 0 : i32
    return %arg0, %c0_i32, %c0_i32_0 : i32, i32, i32
  }
  func.func @transform_8(%arg0: i32) -> (i32, i32) {
    %c0_i32 = arith.constant 0 : i32
    %c0_i32_0 = arith.constant 0 : i32
    %c0_i32_1 = arith.constant 0 : i32
    return %c0_i32, %c0_i32_0 : i32, i32
  }
  func.func @transform_9(%arg0: i32) -> (i32, i32) {
    %c0_i32 = arith.constant 0 : i32
    %c0_i32_0 = arith.constant 0 : i32
    %c0_i32_1 = arith.constant 0 : i32
    return %c0_i32, %c0_i32_0 : i32, i32
  }
  func.func @transform_10(%arg0: i32) -> (i32, i32, i32) {
    %c0_i32 = arith.constant 0 : i32
    %c0_i32_0 = arith.constant 0 : i32
    %c0_i32_1 = arith.constant 0 : i32
    return %arg0, %c0_i32, %c0_i32_0 : i32, i32, i32
  }
  func.func @transform_11(%arg0: i32) -> (i32, i32, i32) {
    %c0_i32 = arith.constant 0 : i32
    %c0_i32_0 = arith.constant 0 : i32
    %c0_i32_1 = arith.constant 0 : i32
    return %arg0, %c0_i32, %c0_i32_0 : i32, i32, i32
  }
}

</mosaic_0001>

<bundles_post_ra>
// kernel: tpu_custom_call.1
= control target key start
LH: loop header
LB: loop body
LE: loop exit
PB: predicated region body
PF: predicated region fallthrough
CT: control target
= control target key end

     0   :  { %s5332_s0 = inlined_call_operand.vmem [shape: f32[2,3,16], index: 0, kind: input, shape index: {}]   ;;  %s5333_s1 = inlined_call_operand.vmem [shape: f32[2,3,16], index: 1, kind: input, shape index: {}]   ;;  %s5334_s2 = inlined_call_operand.vmem [shape: f32[2,64,16], index: 2, kind: input, shape index: {}]   ;;  %s5335_s3 = inlined_call_operand.vmem [shape: f32[2,64,16], index: 3, kind: input, shape index: {}]   ;;  %s5336_s4 = inlined_call_operand.vmem [shape: f32[2,64,1], index: 4, kind: input, shape index: {}]   ;;  %s5337_s5 = inlined_call_operand.vmem [shape: f32[2,64,1], index: 5, kind: input, shape index: {}]   ;;  %s5338_s6 = inlined_call_operand.vmem [shape: f32[2,3,1], index: 6, kind: input, shape index: {}]   ;;  %s5339_s7 = inlined_call_operand.vmem [shape: f32[2,3,1], index: 7, kind: input, shape index: {}]   ;;  %s5340_s8 = inlined_call_operand.vmem [shape: f32[432,192], index: 8, kind: input, shape index: {}]   ;;  %s5341_s9 = inlined_call_operand.vmem [shape: f32[32,17], index: 9, kind: input, shape index: {}]   ;;  %s5342_s10 = inlined_call_operand.hbm [shape: f32[2,1,256], index: 10, kind: output, shape index: {0}]   ;;  %s5343_s11 = inlined_call_operand.hbm [shape: f32[2,1,16], index: 11, kind: output, shape index: {1}]  }
   0x1   :  { %5383 = sst [smem:[#allocation40_spill]] %s5332_s0 }
   0x2   :  { %5384 = sst [smem:[#allocation41_spill]] %s5333_s1 }
   0x3   :  { %5385 = sst [smem:[#allocation42_spill]] %s5334_s2 }
   0x4   :  { %17 = vsyncpa [#allocation3], 0 }
   0x5   :  { %19 = vsyncpa [#allocation3 + $0x1], 0 }
   0x6   :  { %20 = vsyncpa [#allocation5], 0 }
   0x7   :  { %22 = vsyncpa [#allocation5 + $0x1], 0  ;;  %s4136_s17 = smov 0   ;;  %s4138_s18 = smov 0  }
   0x8   :  { %s4140_s19 = smov 0   ;;  %s4142_s20 = smov 0  }
   0x9 LB: > { %s4157_s21 = sadd.s32 4294967295, %s4048_s20   ;;  %s3644_s22 = sadd.s32 4294967294, %s4048_s20   ;;  %s4048_s20 = sphi %s4142_s20, %s5480_s20   ;;  %s4044_s19 = sphi %s4140_s19, %s5479_s19   ;;  %s4040_s18 = sphi %s4138_s18, %s5478_s18   ;;  %s4036_s17 = sphi %s4136_s17, %s5477_s17  }
   0xa   : > { %s4161_s23 = sadd.s32 1, %s4048_s20   ;;  %s285_s24 = sadd.s32 1, %s4044_s19 }
   0xb   : > { %s282_s25 = ssub.s32 %s4048_s20, %s4161_s23  ;;  %p295_p0 = scmp.ne.s32.totalorder %s4044_s19, %s4040_s18 }
   0xc   : > { %p283_p1 = scmp.eq.s32.totalorder %s282_s25, 0  ;;  %p296_p2 = scmp.eq.s32.totalorder %s4157_s21, 1 }
   0xd   : > { %p301_p3 = scmp.ne.s32.totalorder %s4040_s18, %s4036_s17  ;;  %p302_p4 = scmp.eq.s32.totalorder %s3644_s22, 1 }
   0xe   : > { %s4172_s26 = scalar_select %p283_p1, %s4044_s19, %s285_s24  }
   0xf   : > { %p4174_p5 = por %p296_p2, %p295_p0  ;;  %p4178_p6 = por %p302_p4, %p301_p3 }
  0x10   : > { %p3647_p7 = scmp.ge.s32.totalorder %s4048_s20, 1  ;;  %p412_p8 = scmp.lt.s32.totalorder %s4048_s20, 3 }
  0x12   : > { %p413_p9 = pnand %p3647_p7, %p412_p8 }
  0x14   : > { %416 = sbr.rel (%p413_p9) target bundleno = 2329 (0x919), region = 60 }
  0x19   : > { %v5344_v0 = vlaneseq  ;;  %p487_p10 = scmp.lt.s32.totalorder %s4157_s21, 1  ;;  %v5345_v1 = vmov 0.0   ;;  %v4051_v4 = vmov 0   ;;  %s5394_s0 = sld [smem:[#allocation40_spill]]  ;;  %v4052_v17 = vmov 1.0   ;;  %v4353_v59 = vld [vmem:[%s5341_s9 + $0x18] sm:$0xff] }
  0x1a   : > { %653 = vmatprep.mubr.f32.mxu0 %v5345_v1  ;;  %727 = vmatprep.mubr.f32.mxu1 %v5345_v1  ;;  %s5395_s1 = sld [smem:[#allocation41_spill]]  ;;  %vm585_vm8 = vcmask 130048   ;;  %5409 = vst [vmem:[#allocation10_spill] sm:$0xff] %v4353_v59  ;;  %v4365_v62 = vld [vmem:[%s5341_s9 + $0x8] sm:$0xff]  ;;  %v4054_v11 = vmov 2   ;;  %v4055_v12 = vmov 4  }
  0x1b   : > { %v4188_v2 = vand.u32 127, %v5344_v0  ;;  %v4191_v3 = vshrl.u32 %v5344_v0, 7  ;;  %s488_s29 = scalar_select %p487_p10, %s4157_s21, 1  ;;  %3874 = vset.pattern.permute.xlu1 %v4051_v4  ;;  %3873 = vset.pattern.permute.xlu0 %v4051_v4  ;;  %5410 = vst [vmem:[#allocation11_spill] sm:$0xff] %v4365_v62  ;;  %v4056_v13 = vmov 8   ;;  %vm1378_vm9 = vcmask 1042432  }
  0x1c   : > { %s5408_s2 = sld [smem:[#allocation42_spill]]  ;;  %vm1130_vm14 = vcmask 523264   ;;  %vm1374_vm15 = vcmask 23552  }
  0x1d   : > { %5388 = vst [vmem:[#allocation8_spill] sm:$0xff] %v4188_v2  ;;  %5389 = vst [vmem:[#allocation9_spill] sm:$0xff] %v4191_v3  ;;  %v561_v5 = vadd.s32 128, %v4188_v2  ;;  %v564_v6 = vadd.s32 8, %v4191_v3  ;;  %v565_v7 = vand.u32 15, %v4188_v2  ;;  %v575_v8 = vshra.s32 %v4188_v2, 4 }
  0x1e   : > { %s4198_s30 = sshll.u32 %s488_s29, 2  ;;  %s3779_s24 = sshll.u32 %s488_s29, 6 }
  0x1f   : > { %v566_v9 = vand.u32 15, %v561_v5  ;;  %v576_v10 = vshra.s32 %v561_v5, 4  ;;  %vm4200_vm0 = vcmp.eq.s32.totalorder %v565_v7, %v564_v6  ;;  %vm4204_vm1 = vcmp.eq.s32.totalorder %v575_v8, %v564_v6  ;;  %s490_s14 = scalar_lea.vmem %s5394_s0, %s4198_s30  ;;  %s4255_s13 = scalar_lea.vmem %s5336_s4, %s3779_s24  ;;  %v4376_v5 = vld [vmem:[%s5341_s9 + $0x10] sm:$0xff] }
  0x20   : > { %s494_s22 = scalar_lea.vmem %s5395_s1, %s4198_s30  ;;  %vm4239_vm6 = vcmp.eq.s32.totalorder %v565_v7, %v4191_v3  ;;  %vm4244_vm7 = vcmp.eq.s32.totalorder %v575_v8, %v4191_v3  ;;  %v523_v20 = vld [vmem:[%s490_s14] sm:$0x7]  ;;  %s4264_s16 = scalar_lea.vmem %s5337_s5, %s3779_s24  ;;  %v546_v22 = vld [vmem:[%s4255_s13 + $0x28] sm:$0xff]  ;;  %v548_v24 = vld [vmem:[%s4255_s13 + $0x38] sm:$0xff]  ;;  %5411 = vst [vmem:[#allocation12_spill] sm:$0xff] %v4376_v5 }
  0x21   : > { %vm4216_vm2 = vcmp.eq.s32.totalorder %v566_v9, %v564_v6  ;;  %vm4220_vm3 = vcmp.eq.s32.totalorder %v576_v10, %v564_v6  ;;  %vm4225_vm4 = vcmp.eq.s32.totalorder %v566_v9, %v4191_v3  ;;  %vm4230_vm5 = vcmp.eq.s32.totalorder %v576_v10, %v4191_v3  ;;  %v524_v21 = vld [vmem:[%s494_s22] sm:$0x7]  ;;  %s4278_s29 = scalar_lea.vmem %s5335_s3, %s3779_s24  ;;  %v554_v23 = vld [vmem:[%s4264_s16 + $0x28] sm:$0xff]  ;;  %v556_v25 = vld [vmem:[%s4264_s16 + $0x38] sm:$0xff]  ;;  %s518_s15 = scalar_lea.vmem %s5338_s6, %s4198_s30 }
  0x22   : > { %3661 = vmatprep.subr.msk.mxu0 %vm4216_vm2, %v4052_v17  ;;  %3666 = vmatprep.subr.msk.mxu1 %vm4220_vm3, %v4052_v17  ;;  %s4273_s25 = scalar_lea.vmem %s5408_s2, %s3779_s24  ;;  %v533_v27 = vld [vmem:[%s4278_s29] sm:$0xff]  ;;  %v1031_v28 = vsub.f32 %v546_v22, %v554_v23  ;;  %v1033_v30 = vsub.f32 %v548_v24, %v556_v25  ;;  %v547_v32 = vld [vmem:[%s4255_s13 + $0x30] sm:$0xff]  ;;  %v534_v35 = vld [vmem:[%s4278_s29 + $0x8] sm:$0xff]  ;;  %s522_s12 = scalar_lea.vmem %s5339_s7, %s4198_s30  ;;  %v4053_v9 = vmov 5  }
  0x23   : > { %3662 = vmatpush1.msk.msra.mxu0 %vm4200_vm0, %v4052_v17  ;;  %3667 = vmatpush1.msk.msra.mxu1 %vm4204_vm1, %v4052_v17  ;;  %v525_v26 = vld [vmem:[%s4273_s25] sm:$0xff]  ;;  %v555_v33 = vld [vmem:[%s4264_s16 + $0x30] sm:$0xff]  ;;  %v526_v34 = vld [vmem:[%s4273_s25 + $0x8] sm:$0xff]  ;;  %s4065_s30 = smov 16   ;;  %s5269_s14 = sand.u32 1, %s4040_s18  }
  0x24   : > { %3663 = vmatprep.subr.msk.mxu0 %vm4225_vm4, %v4052_v17  ;;  %3668 = vmatprep.subr.msk.mxu1 %vm4230_vm5, %v4052_v17  ;;  %v545_v29 = vld [vmem:[%s4255_s13 + $0x20] sm:$0xff]  ;;  %v543_v37 = vld [vmem:[%s4255_s13 + $0x10] sm:$0xff]  ;;  %v1032_v38 = vsub.f32 %v547_v32, %v555_v33  ;;  %v544_v40 = vld [vmem:[%s4255_s13 + $0x18] sm:$0xff]  ;;  %s3776_s22 = sshll.u32 %s4157_s21, 4  ;;  %s4073_s24 = smov [#allocation4]  }
  0x25   : > { %3664 = vmatpush1.msk.msra.mxu0 %vm4239_vm6, %v4052_v17  ;;  %3669 = vmatpush1.msk.msra.mxu1 %vm4244_vm7, %v4052_v17  ;;  %v553_v31 = vld [vmem:[%s4264_s16 + $0x20] sm:$0xff]  ;;  %v551_v39 = vld [vmem:[%s4264_s16 + $0x10] sm:$0xff]  ;;  %v552_v41 = vld [vmem:[%s4264_s16 + $0x18] sm:$0xff] }
  0x26   : > { %3665 = vmatmul.mubr.msk.f32.vlgmr.msra.gmra.mxu0 %vm585_vm8, %v523_v20  ;;  %3670 = vmatmul.mubr.msk.f32.vlgmr.msra.gmra.mxu1 %vm585_vm8, %v524_v21  ;;  %v1030_v36 = vsub.f32 %v545_v29, %v553_v31  ;;  %v527_v42 = vld [vmem:[%s4273_s25 + $0x10] sm:$0xff]  ;;  %v1028_v44 = vsub.f32 %v543_v37, %v551_v39  ;;  %v541_v45 = vld [vmem:[%s4255_s13] sm:$0xff]  ;;  %v1029_v46 = vsub.f32 %v544_v40, %v552_v41  ;;  %v542_v48 = vld [vmem:[%s4255_s13 + $0x8] sm:$0xff]  ;;  %s5276_s13 = scalar_lea.hbm %s5343_s11, %s3776_s22 }
  0x27   : > { %3671 = vmatprep.subr.msk.mxu0 %vm4216_vm2, %v4052_v17  ;;  %3683 = vmatprep.subr.msk.mxu1 %vm4220_vm3, %v4052_v17  ;;  %v535_v43 = vld [vmem:[%s4278_s29 + $0x10] sm:$0xff]  ;;  %v549_v47 = vld [vmem:[%s4264_s16] sm:$0xff]  ;;  %v550_v49 = vld [vmem:[%s4264_s16 + $0x8] sm:$0xff]  ;;  %s4067_s16 = smov 64  }
  0x28   : > { %3672 = vmatpush1.msk.msra.mxu0 %vm4200_vm0, %v4052_v17  ;;  %3684 = vmatpush1.msk.msra.mxu1 %vm4204_vm1, %v4052_v17  ;;  %v528_v50 = vld [vmem:[%s4273_s25 + $0x18] sm:$0xff]  ;;  %v1026_v52 = vsub.f32 %v541_v45, %v549_v47  ;;  %v1027_v53 = vsub.f32 %v542_v48, %v550_v49  ;;  %v557_v54 = vld [vmem:[%s518_s15] sm:$0x7]  ;;  %v530_v60 = vld [vmem:[%s4273_s25 + $0x28] sm:$0xff]  ;;  %s3962_s15 = sshll.u32 %s4073_s24, 4  ;;  %s3963_s15 = int_to_ptr.vmem [resolvable:$false] %s3962_s15 }
  0x29   : > { %3673 = vmatprep.subr.msk.mxu0 %vm4225_vm4, %v4052_v17  ;;  %3685 = vmatprep.subr.msk.mxu1 %vm4230_vm5, %v4052_v17  ;;  %v536_v51 = vld [vmem:[%s4278_s29 + $0x18] sm:$0xff]  ;;  %v558_v55 = vld [vmem:[%s522_s12] sm:$0x7]  ;;  %v538_v61 = vld [vmem:[%s4278_s29 + $0x28] sm:$0xff]  ;;  %vm1264_vm4 = vcmask 261120   ;;  %vm2602_vm5 = vcmask 1044480  }
  0x2a   : > { %3674 = vmatpush1.msk.msra.mxu0 %vm4239_vm6, %v4052_v17  ;;  %822 = vmatprep.mubr.f32.mxu0 %v5345_v1  ;;  %v529_v56 = vld [vmem:[%s4273_s25 + $0x20] sm:$0xff]  ;;  %v1090_v58 = vsub.f32 %v557_v54, %v558_v55  ;;  %v531_v63 = vld [vmem:[%s4273_s25 + $0x30] sm:$0xff]  ;;  %v532_v6 = vld [vmem:[%s4273_s25 + $0x38] sm:$0xff]  ;;  %vm2589_vm6 = vcmask 236544   ;;  %s4066_s25 = smov 32   ;;  %s486_s12 = scalar_lea.vmem [#allocation4], %s5269_s14 }
  0x2b   : > { %3686 = vmatpush1.msk.msra.mxu1 %vm4244_vm7, %v4052_v17  ;;  %959 = vmatprep.mubr.f32.mxu1 %v5345_v1  ;;  %v537_v57 = vld [vmem:[%s4278_s29 + $0x20] sm:$0xff]  ;;  %v539_v4 = vld [vmem:[%s4278_s29 + $0x30] sm:$0xff]  ;;  %v540_v7 = vld [vmem:[%s4278_s29 + $0x38] sm:$0xff]  ;;  %s3964_s1 = scalar_lea.vmem %s3963_s15, 32 }
  0x2c   : > { %3675 = vmatmul.mubr.msk.f32.vlgmr.msra.gmra.mxu0 %vm585_vm8, %v525_v26  ;;  %3687 = vmatmul.mubr.msk.f32.vlgmr.msra.gmra.mxu1 %vm585_vm8, %v533_v27  ;;  %v4389_v8 = vld [vmem:[%s5341_s9] sm:$0xff] }
  0x2d   : > { %828 = vmatprep.mubr.f32.mxu0 %v5345_v1  ;;  %965 = vmatprep.mubr.f32.mxu1 %v5345_v1  ;;  %5412 = vst [vmem:[#allocation13_spill] sm:$0xff] %v4389_v8  ;;  %v4398_v10 = vld [vmem:[%s5341_s9] sm:$0x7] }
  0x2e   : > { %1061 = vperm.xlu1 %3874, %v1031_v28   ;;  %1071 = vperm.xlu0 %3873, %v1033_v30   ;;  %5413 = vst [vmem:[#allocation14_spill] sm:$0xff] %v4398_v10 }
  0x30   : > { %3676 = vmatmul.mubr.msk.f32.gmra.mxu0 %vm585_vm8, %v526_v34  ;;  %3688 = vmatmul.mubr.msk.f32.gmra.mxu1 %vm585_vm8, %v534_v35 }
  0x31   : > { %834 = vmatprep.mubr.f32.mxu0 %v5345_v1  ;;  %971 = vmatprep.mubr.f32.mxu1 %v5345_v1 }
  0x32   : > { %1056 = vperm.xlu1 %3874, %v1030_v36   ;;  %1066 = vperm.xlu0 %3873, %v1032_v38  }
  0x34   : > { %3677 = vmatmul.mubr.msk.f32.gmra.mxu0 %vm585_vm8, %v527_v42  ;;  %3689 = vmatmul.mubr.msk.f32.gmra.mxu1 %vm585_vm8, %v535_v43 }
  0x35   : > { %840 = vmatprep.mubr.f32.mxu0 %v5345_v1  ;;  %977 = vmatprep.mubr.f32.mxu1 %v5345_v1 }
  0x36   : > { %1046 = vperm.xlu1 %3874, %v1028_v44   ;;  %1051 = vperm.xlu0 %3873, %v1029_v46  }
  0x38   : > { %3678 = vmatmul.mubr.msk.f32.gmra.mxu0 %vm585_vm8, %v528_v50  ;;  %3690 = vmatmul.mubr.msk.f32.gmra.mxu1 %vm585_vm8, %v536_v51 }
  0x39   : > { %846 = vmatprep.mubr.f32.mxu0 %v5345_v1  ;;  %983 = vmatprep.mubr.f32.mxu1 %v5345_v1 }
  0x3a   : > { %1036 = vperm.xlu1 %3874, %v1026_v52   ;;  %1041 = vperm.xlu0 %3873, %v1027_v53  }
  0x3c   : > { %3679 = vmatmul.mubr.msk.f32.gmra.mxu0 %vm585_vm8, %v529_v56  ;;  %3691 = vmatmul.mubr.msk.f32.gmra.mxu1 %vm585_vm8, %v537_v57 }
  0x3d   : > { %852 = vmatprep.mubr.f32.mxu0 %v5345_v1  ;;  %989 = vmatprep.mubr.f32.mxu1 %v5345_v1 }
  0x3e   : > { %1127 = vperm.xlu1 %3874, %v4353_v59   ;;  %1093 = vperm.xlu0 %3873, %v1090_v58  }
  0x40   : > { %3680 = vmatmul.mubr.msk.f32.gmra.mxu0 %vm585_vm8, %v530_v60  ;;  %3692 = vmatmul.mubr.msk.f32.gmra.mxu1 %vm585_vm8, %v538_v61 }
  0x41   : > { %858 = vmatprep.mubr.f32.mxu0 %v5345_v1  ;;  %995 = vmatprep.mubr.f32.mxu1 %v5345_v1 }
  0x42   : > { %1117 = vperm.xlu1 %3874, %v4365_v62   ;;  %1122 = vperm.xlu0 %3873, %v4376_v5  }
  0x44   : > { %3681 = vmatmul.mubr.msk.f32.gmra.mxu0 %vm585_vm8, %v531_v63  ;;  %3693 = vmatmul.mubr.msk.f32.gmra.mxu1 %vm585_vm8, %v539_v4 }
  0x45   : > { %864 = vmatprep.mubr.f32.mxu0 %v5345_v1  ;;  %1001 = vmatprep.mubr.f32.mxu1 %v5345_v1 }
  0x46   : > { %3875 = vset.pattern.permute.xlu1 %v4053_v9  ;;  %1112 = vperm.xlu0 %3873, %v4389_v8  }
  0x47   : > { %1675 = vperm.xlu1 %3875, %v4353_v59  }
  0x48   : > { %3682 = vmatmul.mubr.msk.f32.gmra.mxu0 %vm585_vm8, %v532_v6  ;;  %3694 = vmatmul.mubr.msk.f32.gmra.mxu1 %vm585_vm8, %v540_v7 }
  0x49   : > { %1207 = vmatprep.mubr.f32.mxu0 %v5345_v1  ;;  %1341 = vmatprep.mubr.f32.mxu1 %v5345_v1 }
  0x4a   : > { %3876 = vset.pattern.permute.xlu0 %v4054_v11 }
  0x4b   : > { %1671 = vperm.xlu1 %3875, %v4376_v5   ;;  %1371 = vperm.xlu0 %3876, %v4398_v10  }
  0x4f   : > { %1667 = vperm.xlu1 %3875, %v4365_v62   ;;  %3877 = vset.pattern.permute.xlu0 %v4055_v12 }
  0x50   : > { %1800 = vperm.xlu0 %3877, %v4353_v59  }
  0x53   : > { %1663 = vperm.xlu1 %3875, %v4389_v8  }
  0x54   : > { %1792 = vperm.xlu0 %3877, %v4365_v62  }
  0x57   : > { %3878 = vset.pattern.permute.xlu1 %v4055_v12 }
  0x58   : > { %1796 = vperm.xlu1 %3878, %v4376_v5   ;;  %3879 = vset.pattern.permute.xlu0 %v4056_v13 }
  0x59   : > { %2294 = vperm.xlu0 %3879, %v4353_v59  }
  0x5c   : > { %1788 = vperm.xlu1 %3878, %v4389_v8  }
  0x60   : > { %3880 = vset.pattern.permute.xlu1 %v4056_v13 }
  0x61   : > { %2290 = vperm.xlu1 %3880, %v4376_v5  }
  0x65   : > { %2286 = vperm.xlu1 %3880, %v4365_v62  }
  0x69   : > { %2282 = vperm.xlu1 %3880, %v4389_v8  }
  0xa9   : > { %v4414_v14 = vpop.permute.xlu1 %1061 }
  0xad   : > { %v4416_v15 = vpop.permute.xlu1 %1056 }
  0xb1   : > { %v4418_v16 = vpop.permute.xlu1 %1046 }
  0xb5   : > { %v4420_v17 = vpop.permute.xlu1 %1036 }
  0xb9   : > { %v4422_v18 = vpop.permute.xlu1 %1127 }
  0xba   : > { %5414 = vst [vmem:[#allocation15_spill] sm:$0xff] %v4422_v18 }
  0xbd   : > { %v4424_v19 = vpop.permute.xlu1 %1117 }
  0xbe   : > { %5415 = vst [vmem:[#allocation16_spill] sm:$0xff] %v4424_v19 }
  0xc2   : > { %v4426_v20 = vpop.permute.xlu1 %1675 }
  0xc3   : > { %5416 = vst [vmem:[#allocation17_spill] sm:$0xff] %v4426_v20 }
  0xc6   : > { %v4428_v21 = vpop.permute.xlu1 %1671 }
  0xc7   : > { %5417 = vst [vmem:[#allocation18_spill] sm:$0xff] %v4428_v21 }
  0xca   : > { %v4451_v31 = vpop.permute.xlu1 %1667 }
  0xcb   : > { %5422 = vst [vmem:[#allocation23_spill] sm:$0xff] %v4451_v31 }
  0xce   : > { %v4466_v44 = vpop.permute.xlu1 %1663 }
  0xcf   : > { %5426 = vst [vmem:[#allocation27_spill] sm:$0xff] %v4466_v44 }
  0xd3   : > { %v4482_v57 = vpop.permute.xlu1 %1796 }
  0xd4   : > { %5430 = vst [vmem:[#allocation31_spill] sm:$0xff] %v4482_v57 }
  0xe6   : > { %v4430_v22 = vpop.f32.mrf.mxu0  ;;  %v4432_v23 = vpop.f32.mrf.mxu1 }
  0xe7   : > { %5418 = vst [vmem:[#allocation19_spill] sm:$0xff] %v4430_v22  ;;  %5419 = vst [vmem:[#allocation20_spill] sm:$0xff] %v4432_v23  ;;  %v4436_v24 = vsub.f32 %v4430_v22, %v4432_v23 }
  0xe8   : > { %v4438_v25 = vpop.f32.mrf.mxu0  ;;  %v4440_v26 = vpop.f32.mrf.mxu1 }
  0xe9   : > { %5420 = vst [vmem:[#allocation21_spill] sm:$0xff] %v4438_v25  ;;  %5421 = vst [vmem:[#allocation22_spill] sm:$0xff] %v4440_v26  ;;  %v1542_v27 = vmul.f32 %v4436_v24, %v4436_v24  ;;  %v4446_v28 = vsub.f32 %v4438_v25, %v4440_v26 }
  0xeb   : > { %v1544_v29 = vsel %vm1378_vm9, %v1542_v27, 0.0  ;;  %v1543_v30 = vmul.f32 %v4446_v28, %v4446_v28 }
  0xec   : > { %v1545_v32 = vrot.slane %v1544_v29, 4  ;;  %v4453_v33 = vpop.f32.mrf.mxu0  ;;  %v4455_v34 = vpop.f32.mrf.mxu1 }
  0xed   : > { %5423 = vst [vmem:[#allocation24_spill] sm:$0xff] %v4453_v33  ;;  %v1551_v35 = vsel %vm1378_vm9, %v1543_v30, 0.0  ;;  %v4506_v9 = vsub.f32 %v4453_v33, %v4455_v34  ;;  %v4524_v30 = vpop.permute.xlu1 %1788 }
  0xee   : > { %v1546_v36 = vadd.f32 %v1545_v32, %v1544_v29  ;;  %v1552_v37 = vrot.slane %v1551_v35, 4  ;;  %v4458_v38 = vpop.f32.mrf.mxu0  ;;  %v4460_v39 = vpop.f32.mrf.mxu1  ;;  %5434 = vst [vmem:[#allocation35_spill] sm:$0xff] %v4524_v30 }
  0xef   : > { %5424 = vst [vmem:[#allocation25_spill] sm:$0xff] %v4458_v38  ;;  %v4518_v27 = vsub.f32 %v4458_v38, %v4460_v39 }
  0xf0   : > { %v1547_v40 = vrot.slane %v1546_v36, 2  ;;  %v1553_v41 = vadd.f32 %v1552_v37, %v1551_v35  ;;  %v4462_v42 = vpop.f32.mrf.mxu0  ;;  %v4464_v43 = vpop.f32.mrf.mxu1 }
  0xf1   : > { %5425 = vst [vmem:[#allocation26_spill] sm:$0xff] %v4462_v42  ;;  %v4493_v63 = vsub.f32 %v4462_v42, %v4464_v43  ;;  %v1573_v0 = vmul.f32 %v4518_v27, %v4518_v27 }
  0xf2   : > { %v1548_v45 = vadd.f32 %v1547_v40, %v1546_v36  ;;  %v1554_v46 = vrot.slane %v1553_v41, 2  ;;  %v4468_v47 = vpop.f32.mrf.mxu0  ;;  %v4470_v48 = vpop.f32.mrf.mxu1 }
  0xf3   : > { %5427 = vst [vmem:[#allocation28_spill] sm:$0xff] %v4468_v47  ;;  %v4502_v7 = vsub.f32 %v4468_v47, %v4470_v48  ;;  %v1574_v32 = vmul.f32 %v4493_v63, %v4493_v63 }
  0xf4   : > { %v1549_v49 = vrot.slane %v1548_v45, 1  ;;  %v1555_v50 = vadd.f32 %v1554_v46, %v1553_v41  ;;  %v4472_v51 = vpop.f32.mrf.mxu0  ;;  %v4474_v52 = vpop.f32.mrf.mxu1 }
  0xf5   : > { %5428 = vst [vmem:[#allocation29_spill] sm:$0xff] %v4472_v51  ;;  %v4510_v11 = vsub.f32 %v4472_v51, %v4474_v52  ;;  %v1575_v40 = vmul.f32 %v4502_v7, %v4502_v7 }
  0xf6   : > { %v4476_v53 = vadd.f32 %v1549_v49, %v1548_v45  ;;  %v1556_v54 = vrot.slane %v1555_v50, 1  ;;  %v4478_v55 = vpop.f32.mrf.mxu0  ;;  %v4480_v56 = vpop.f32.mrf.mxu1  ;;  %v1572_v45 = vmul.f32 %v4506_v9, %v4506_v9 }
  0xf7   : > { %5429 = vst [vmem:[#allocation30_spill] sm:$0xff] %v4478_v55  ;;  %v4522_v29 = vsub.f32 %v4478_v55, %v4480_v56  ;;  %v1576_v46 = vmul.f32 %v4510_v11, %v4510_v11  ;;  %v1601_v30 = vadd.f32 %v1575_v40, %v1573_v0  ;;  %v1072_v0 = vpop.permute.xlu0 %1071 }
  0xf8   : > { %3905 = vrsqrt.f32 %v4476_v53  ;;  %v4485_v58 = vpop.f32.mrf.mxu0  ;;  %v4487_v60 = vpop.f32.mrf.mxu1  ;;  %v4489_v61 = vadd.f32 %v1556_v54, %v1555_v50  ;;  %v1588_v2 = vadd.f32 %v1574_v32, %v1572_v45  ;;  %vm1560_vm10 = vcmp.eq.f32.partialorder %v4476_v53, inf }
  0xf9   : > { %5431 = vst [vmem:[#allocation32_spill] sm:$0xff] %v4485_v58  ;;  %v4530_v35 = vsub.f32 %v4485_v58, %v4487_v60  ;;  %v1577_v1 = vmul.f32 %v4522_v29, %v4522_v29  ;;  %v2291_v32 = vpop.permute.xlu1 %2290  ;;  %vm1562_vm11 = vcmp.eq.f32.partialorder %v4476_v53, 0.0 }
  0xfa   : > { %v4495_v4 = vpop.f32.mrf.mxu0  ;;  %v4497_v6 = vpop.f32.mrf.mxu1  ;;  %3907 = vrsqrt.f32 %v4489_v61  ;;  %v1589_v45 = vadd.f32 %v1588_v2, %v1576_v46  ;;  %v1563_v46 = vand.u32 2147483648, %v4476_v53  ;;  %vm1567_vm12 = vcmp.eq.f32.partialorder %v4489_v61, inf }
  0xfb   : > { %5432 = vst [vmem:[#allocation33_spill] sm:$0xff] %v4495_v4  ;;  %v4540_v41 = vsub.f32 %v4495_v4, %v4497_v6  ;;  %v1578_v22 = vmul.f32 %v4530_v35, %v4530_v35  ;;  %v1602_v40 = vadd.f32 %v1601_v30, %v1577_v1  ;;  %vm1569_vm13 = vcmp.eq.f32.partialorder %v4489_v61, 0.0 }
  0xfc   : > { %v4512_v12 = vpop.f32.mrf.mxu0  ;;  %v4514_v13 = vpop.f32.mrf.mxu1 }
  0xfd   : > { %5433 = vst [vmem:[#allocation34_spill] sm:$0xff] %v4512_v12  ;;  %v4548_v49 = vsub.f32 %v4512_v12, %v4514_v13  ;;  %v1579_v57 = vmul.f32 %v4540_v41, %v4540_v41  ;;  %v1590_v62 = vadd.f32 %v1589_v45, %v1578_v22  ;;  %v1570_v45 = vand.u32 2147483648, %v4489_v61  ;;  %v2287_v58 = vpop.permute.xlu1 %2286 }
  0xfe   : > { %v4532_v36 = vpop.f32.mrf.mxu0  ;;  %v4534_v37 = vpop.f32.mrf.mxu1 }
  0xff   : > { %5435 = vst [vmem:[#allocation36_spill] sm:$0xff] %v4532_v36  ;;  %v4560_v3 = vsub.f32 %v4532_v36, %v4534_v37  ;;  %v1580_v31 = vmul.f32 %v4548_v49, %v4548_v49  ;;  %v1603_v1 = vadd.f32 %v1602_v40, %v1579_v57 }
 0x100   : > { %v4550_v50 = vpop.f32.mrf.mxu0  ;;  %v4552_v54 = vpop.f32.mrf.mxu1 }
 0x101   : > { %v4566_v25 = vsub.f32 %v4550_v50, %v4552_v54  ;;  %v1581_v18 = vmul.f32 %v4560_v3, %v4560_v3  ;;  %v1591_v38 = vadd.f32 %v1590_v62, %v1580_v31 }
 0x102   : > { %v4568_v23 = vpop.f32.mrf.mxu0  ;;  %v4570_v26 = vpop.f32.mrf.mxu1 }
 0x103   : > { %v4576_v44 = vsub.f32 %v4568_v23, %v4570_v26  ;;  %v1582_v8 = vmul.f32 %v4566_v25, %v4566_v25  ;;  %v1604_v55 = vadd.f32 %v1603_v1, %v1581_v18  ;;  %v1067_v18 = vpop.permute.xlu0 %1066 }
 0x104   : > { %v4581_v20 = vpop.f32.mrf.mxu0  ;;  %v4583_v21 = vpop.f32.mrf.mxu1 }
 0x105   : > { %v3906_v19 = vpop.eup %3905  ;;  %v4590_v10 = vsub.f32 %v4581_v20, %v4583_v21  ;;  %v1583_v30 = vmul.f32 %v4576_v44, %v4576_v44  ;;  %v1592_v4 = vadd.f32 %v1591_v38, %v1582_v8 }
 0x106   : > { %v1559_v2 = vmul.f32 %v3906_v19, %v4476_v53  ;;  %v4596_v59 = vpop.f32.mrf.mxu0  ;;  %v4598_v5 = vpop.f32.mrf.mxu1 }
 0x107   : > { %v4605_v33 = vsub.f32 %v4596_v59, %v4598_v5  ;;  %v3908_v19 = vpop.eup %3907  ;;  %v1584_v42 = vmul.f32 %v4590_v10, %v4590_v10  ;;  %v1605_v8 = vadd.f32 %v1604_v55, %v1583_v30 }
 0x108   : > { %v1561_v22 = vsel %vm1560_vm10, %v4476_v53, %v1559_v2  ;;  %v4613_v47 = vpop.f32.mrf.mxu0  ;;  %v4615_v57 = vpop.f32.mrf.mxu1  ;;  %v1566_v51 = vmul.f32 %v3908_v19, %v4489_v61 }
 0x109   : > { %v4619_v40 = vsel %vm1562_vm11, %v1563_v46, %v1561_v22  ;;  %v1585_v2 = vmul.f32 %v4605_v33, %v4605_v33  ;;  %v4632_v12 = vsub.f32 %v4613_v47, %v4615_v57  ;;  %v1593_v22 = vadd.f32 %v1592_v4, %v1584_v42  ;;  %v1052_v4 = vpop.permute.xlu0 %1051 }
 0x10a   : > { %5436 = vst [vmem:[#allocation37_spill] sm:$0xff] %v4619_v40  ;;  %v4625_v62 = vmul.f32 %v2291_v32, %v4619_v40  ;;  %v4628_v31 = vmul.f32 %v2287_v58, %v4619_v40  ;;  %v4634_v53 = vpop.f32.mrf.mxu0  ;;  %v4636_v46 = vpop.f32.mrf.mxu1  ;;  %v1568_v1 = vsel %vm1567_vm12, %v4489_v61, %v1566_v51  ;;  %vm4070_vm11 = vmmov 0  }
 0x10b   : > { %v4644_v38 = vsub.f32 %v4634_v53, %v4636_v46  ;;  %v4646_v19 = vsel %vm1569_vm13, %v1570_v45, %v1568_v1  ;;  %v1606_v40 = vadd.f32 %v1605_v8, %v1585_v2  ;;  %v1088_v45 = vsub.f32 %v4632_v12, %v1072_v0 }
 0x10c   : > { %5437 = vst [vmem:[#allocation38_spill] sm:$0xff] %v4625_v62  ;;  %5438 = vst [vmem:[#allocation39_spill] sm:$0xff] %v4628_v31  ;;  %v1586_v31 = vmul.f32 %v4632_v12, %v4632_v12  ;;  %v4651_v62 = vmul.f32 %v2291_v32, %v4646_v19  ;;  %v4654_v36 = vmul.f32 %v2287_v58, %v4646_v19  ;;  %vm3230_vm12 = vcmask 122880  }
 0x10d   : > { %v1587_v51 = vmul.f32 %v4644_v38, %v4644_v38  ;;  %v1089_v30 = vsub.f32 %v4644_v38, %v1072_v0  ;;  %v1087_v32 = vsub.f32 %v4605_v33, %v1067_v18  ;;  %v1086_v2 = vsub.f32 %v4590_v10, %v1067_v18 }
 0x10e   : > { %v1594_v55 = vadd.f32 %v1593_v22, %v1586_v31  ;;  %v1085_v31 = vsub.f32 %v4576_v44, %v4414_v14  ;;  %v1082_v18 = vsub.f32 %v4548_v49, %v4416_v15 }
 0x10f   : > { %v1607_v61 = vadd.f32 %v1606_v40, %v1587_v51  ;;  %1159 = vmatprep.subr.mxu0 %v1089_v30  ;;  %v1084_v40 = vsub.f32 %v4566_v25, %v4414_v14  ;;  %v1083_v51 = vsub.f32 %v4560_v3, %v4416_v15 }
 0x110   : > { %v1595_v42 = vrot.slane %v1594_v55, 4  ;;  %1160 = vmatpush1.msra.mxu0 %v1088_v45  ;;  %v1081_v45 = vsub.f32 %v4540_v41, %v1052_v4 }
 0x111   : > { %v1608_v1 = vrot.slane %v1607_v61, 4  ;;  %1161 = vmatprep.subr.mxu0 %v1087_v32  ;;  %v1078_v32 = vsub.f32 %v4510_v11, %v4418_v16 }
 0x112   : > { %v1596_v8 = vadd.f32 %v1595_v42, %v1594_v55  ;;  %1162 = vmatpush1.msra.mxu0 %v1086_v2  ;;  %v1080_v42 = vsub.f32 %v4530_v35, %v1052_v4  ;;  %v1075_v4 = vsub.f32 %v4518_v27, %v4420_v17 }
 0x113   : > { %v1609_v58 = vadd.f32 %v1608_v1, %v1607_v61  ;;  %1163 = vmatprep.subr.mxu0 %v1085_v31  ;;  %v1042_v61 = vpop.permute.xlu0 %1041  ;;  %v1079_v1 = vsub.f32 %v4522_v29, %v4418_v16  ;;  %v1102_v16 = vld [vmem:[%s5340_s8] sm:$0xff] }
 0x114   : > { %v1597_v22 = vrot.slane %v1596_v8, 2  ;;  %1164 = vmatpush1.msra.mxu0 %v1084_v40  ;;  %v1077_v15 = vsub.f32 %v4502_v7, %v1042_v61  ;;  %v1074_v40 = vsub.f32 %v4506_v9, %v4420_v17  ;;  %v5439_v17 = vmov 0.0  }
 0x115   : > { %v1610_v0 = vrot.slane %v1609_v58, 2  ;;  %1165 = vmatprep.subr.mxu0 %v1083_v51 }
 0x116   : > { %v1598_v55 = vadd.f32 %v1597_v22, %v1596_v8  ;;  %1166 = vmatpush1.msra.mxu0 %v1082_v18  ;;  %v1076_v8 = vsub.f32 %v4493_v63, %v1042_v61  ;;  %v1103_v18 = vld [vmem:[%s5340_s8 + $0x10] sm:$0xff] }
 0x117   : > { %v1611_v30 = vadd.f32 %v1610_v0, %v1609_v58  ;;  %1167 = vmatprep.subr.mxu0 %v1081_v45  ;;  %v1094_v58 = vpop.permute.xlu0 %1093  ;;  %v1105_v61 = vld [vmem:[%s5340_s8 + $0x30] sm:$0xff] }
 0x118   : > { %v1599_v2 = vrot.slane %v1598_v55, 1  ;;  %1168 = vmatpush1.msra.mxu0 %v1080_v42  ;;  %v1097_v0 = vsub.f32 %v4446_v28, %v1094_v58  ;;  %v1096_v51 = vsub.f32 %v4436_v24, %v1094_v58  ;;  %v1655_v42 = vld [vmem:[%s5340_s8 + $0xa8] sm:$0xff] }
 0x119   : > { %v1612_v14 = vrot.slane %v1611_v30, 1  ;;  %1169 = vmatprep.subr.mxu0 %v1079_v1 }
 0x11a   : > { %1170 = vmatpush1.msra.mxu0 %v1078_v32  ;;  %v1600_v22 = vadd.f32 %v1599_v2, %v1598_v55  ;;  %v1104_v55 = vld [vmem:[%s5340_s8 + $0x20] sm:$0xff] }
 0x11b   : > { %v1613_v31 = vadd.f32 %v1612_v14, %v1611_v30  ;;  %1171 = vmatprep.subr.mxu0 %v1077_v15 }
 0x11c   : > { %1172 = vmatpush1.msra.mxu0 %v1076_v8  ;;  %vm1616_vm1 = vcmp.eq.f32.partialorder %v1600_v22, inf  ;;  %v1619_v8 = vand.u32 2147483648, %v1600_v22  ;;  %vm1618_vm3 = vcmp.eq.f32.partialorder %v1600_v22, 0.0 }
 0x11d   : > { %1173 = vmatprep.subr.mxu0 %v1075_v4  ;;  %3909 = vrsqrt.f32 %v1613_v31  ;;  %vm1623_vm0 = vcmp.eq.f32.partialorder %v1613_v31, inf  ;;  %v1626_v15 = vand.u32 2147483648, %v1613_v31  ;;  %vm1625_vm2 = vcmp.eq.f32.partialorder %v1613_v31, 0.0 }
 0x11e   : > { %1174 = vmatpush1.msra.mxu0 %v1074_v40  ;;  %3911 = vrsqrt.f32 %v1600_v22  ;;  %v4057_v4 = vmov 7   ;;  %v5450_v40 = vld [vmem:[#allocation12_spill] sm:$0xff] }
 0x11f   : > { %3695 = vmatmul.mubr.msk.f32.vlgmr.msra.gmra.mxu0 %vm1130_vm14, %v1102_v16  ;;  %3703 = vmatprep.subr.msk.mxu0 %vm1378_vm9, %v1097_v0  ;;  %v5452_v16 = vld [vmem:[#allocation13_spill] sm:$0xff]  ;;  %v5453_v0 = vld [vmem:[#allocation11_spill] sm:$0xff] }
 0x120   : > { %3704 = vmatpush1.msk.msra.mxu0 %vm1378_vm9, %v1096_v51  ;;  %1213 = vmatprep.mubr.f32.mxu0 %v5439_v17  ;;  %v4058_v51 = vmov 1  }
 0x121   : > { %1698 = vmatprep.subr.mxu0 %v4636_v46  ;;  %v1367_v46 = vld [vmem:[%s5340_s8 + $0x80] sm:$0x7]  ;;  %3882 = vset.pattern.permute.xlu1 %v4057_v4 }
 0x122   : > { %3881 = vset.pattern.permute.xlu0 %v4057_v4  ;;  %2322 = vperm.xlu1 %3882, %v5450_v40  }
 0x123   : > { %3696 = vmatmul.mubr.msk.f32.gmra.mxu0 %vm1130_vm14, %v1103_v18 }
 0x124   : > { %1219 = vmatprep.mubr.f32.mxu0 %v5439_v17 }
 0x126   : > { %2314 = vperm.xlu1 %3882, %v5452_v16  }
 0x127   : > { %3697 = vmatmul.mubr.msk.f32.gmra.mxu0 %vm1130_vm14, %v1104_v55 }
 0x128   : > { %1225 = vmatprep.mubr.f32.mxu0 %v5439_v17 }
 0x12a   : > { %v3910_v30 = vpop.eup %3909  ;;  %3884 = vset.pattern.permute.xlu1 %v4058_v51 }
 0x12b   : > { %3698 = vmatmul.mubr.msk.f32.gmra.mxu0 %vm1130_vm14, %v1105_v61  ;;  %v3912_v45 = vpop.eup %3911  ;;  %v1622_v14 = vmul.f32 %v3910_v30, %v1613_v31  ;;  %1256 = vperm.xlu1 %3884, %v5450_v40   ;;  %v4059_v30 = vmov 3  }
 0x12c   : > { %1449 = vmatprep.mubr.f32.mxu0 %v5439_v17  ;;  %v1615_v1 = vmul.f32 %v3912_v45, %v1600_v22 }
 0x12d   : > { %v1624_v32 = vsel %vm1623_vm0, %v1613_v31, %v1622_v14 }
 0x12e   : > { %v1617_v2 = vsel %vm1616_vm1, %v1600_v22, %v1615_v1  ;;  %v5451_v22 = vld [vmem:[#allocation10_spill] sm:$0xff]  ;;  %v4060_v1 = vmov 10  }
 0x12f   : > { %3705 = vmatmul.mubr.msk.f32.vlgmr.msra.gmra.mxu0 %vm1374_vm15, %v1367_v46  ;;  %2326 = vperm.xlu0 %3881, %v5451_v22   ;;  %v5454_v46 = vld [vmem:[#allocation14_spill] sm:$0xff] }
 0x130   : > { %1699 = vmatpush1.msra.mxu0 %v4615_v57  ;;  %3709 = vmatprep.mubr.msk.f32.mxu0 %vm1130_vm14, %v1655_v42  ;;  %v4721_v57 = vsel %vm1625_vm2, %v1626_v15, %v1624_v32  ;;  %v1123_v42 = vpop.permute.xlu0 %1122  ;;  %v1243_v32 = vld [vmem:[%s5341_s9 + $0x18] sm:$0x1f] }
 0x131   : > { %1700 = vmatprep.subr.mxu0 %v4598_v5  ;;  %v4724_v5 = vsel %vm1618_vm3, %v1619_v8, %v1617_v2  ;;  %1251 = vperm.xlu1 %3884, %v5453_v0   ;;  %v1240_v8 = vld [vmem:[%s5341_s9] sm:$0xff] }
 0x132   : > { %1701 = vmatpush1.msra.mxu0 %v4583_v21  ;;  %v1635_v21 = vadd.f32 1e-08, %v4721_v57 }
 0x133   : > { %1702 = vmatprep.subr.mxu0 %v4570_v26  ;;  %v1634_v26 = vadd.f32 1e-08, %v4724_v5  ;;  %2318 = vperm.xlu0 %3881, %v5453_v0  }
 0x134   : > { %1703 = vmatpush1.msra.mxu0 %v4552_v54  ;;  %3913 = vrcp.f32 %v1635_v21  ;;  %v1113_v21 = vpop.permute.xlu0 %1112 }
 0x135   : > { %1704 = vmatprep.subr.mxu0 %v4534_v37  ;;  %3915 = vrcp.f32 %v1634_v26  ;;  %v5449_v37 = vld [vmem:[#allocation24_spill] sm:$0xff]  ;;  %3885 = vset.pattern.permute.xlu1 %v4059_v30  ;;  %v5455_v26 = vld [vmem:[#allocation15_spill] sm:$0xff] }
 0x136   : > { %1705 = vmatpush1.msra.mxu0 %v4514_v13  ;;  %1459 = vperm.xlu1 %3885, %v5454_v46   ;;  %v5459_v46 = vld [vmem:[#allocation23_spill] sm:$0xff] }
 0x137   : > { %1706 = vmatprep.subr.mxu0 %v4497_v6  ;;  %3883 = vset.pattern.permute.xlu0 %v4058_v51 }
 0x138   : > { %1707 = vmatpush1.msra.mxu0 %v4487_v60  ;;  %v5446_v60 = vld [vmem:[#allocation28_spill] sm:$0xff]  ;;  %1261 = vperm.xlu0 %3883, %v1243_v32   ;;  %v1680_v32 = vmul.f32 %v5459_v46, %v4724_v5 }
 0x139   : > { %1708 = vmatprep.subr.mxu0 %v4480_v56 }
 0x13a   : > { %1709 = vmatpush1.msra.mxu0 %v4474_v52  ;;  %v5443_v52 = vld [vmem:[#allocation32_spill] sm:$0xff]  ;;  %3887 = vset.pattern.permute.xlu1 %v4060_v1 }
 0x13b   : > { %1710 = vmatprep.subr.mxu0 %v4470_v48  ;;  %v5440_v48 = vld [vmem:[#allocation36_spill] sm:$0xff]  ;;  %2707 = vperm.xlu1 %3887, %v5450_v40  }
 0x13c   : > { %1711 = vmatpush1.msra.mxu0 %v4464_v43  ;;  %v5441_v43 = vld [vmem:[#allocation34_spill] sm:$0xff]  ;;  %1246 = vperm.xlu0 %3883, %v1240_v8   ;;  %v5460_v8 = vld [vmem:[#allocation27_spill] sm:$0xff] }
 0x13d   : > { %1712 = vmatprep.subr.mxu0 %v4460_v39  ;;  %v5442_v39 = vld [vmem:[#allocation33_spill] sm:$0xff] }
 0x13e   : > { %1713 = vmatpush1.msra.mxu0 %v4455_v34  ;;  %v5444_v34 = vld [vmem:[#allocation30_spill] sm:$0xff] }
 0x13f   : > { %1714 = vmatprep.subr.mxu0 %v4634_v53  ;;  %2703 = vperm.xlu1 %3887, %v5453_v0  }
 0x140   : > { %1715 = vmatpush1.msra.mxu0 %v4613_v47  ;;  %v5445_v47 = vld [vmem:[#allocation29_spill] sm:$0xff]  ;;  %3886 = vset.pattern.permute.xlu0 %v4060_v1 }
 0x141   : > { %1716 = vmatprep.subr.mxu0 %v4596_v59  ;;  %v3914_v56 = vpop.eup %3913  ;;  %2711 = vperm.xlu0 %3886, %v5451_v22  }
 0x142   : > { %1717 = vmatpush1.msra.mxu0 %v4581_v20  ;;  %v3916_v59 = vpop.eup %3915  ;;  %v5447_v20 = vld [vmem:[#allocation26_spill] sm:$0xff]  ;;  %v1653_v6 = vmul.f32 %v3914_v56, %v4644_v38  ;;  %v1649_v53 = vmul.f32 %v3914_v56, %v4576_v44  ;;  %v1647_v31 = vmul.f32 %v3914_v56, %v4560_v3  ;;  %v1645_v38 = vmul.f32 %v3914_v56, %v4540_v41 }
 0x143   : > { %1718 = vmatprep.subr.mxu0 %v4568_v23  ;;  %v5448_v23 = vld [vmem:[#allocation25_spill] sm:$0xff]  ;;  %v1652_v13 = vmul.f32 %v3916_v59, %v4632_v12  ;;  %v1650_v54 = vmul.f32 %v3916_v59, %v4590_v10  ;;  %v1648_v58 = vmul.f32 %v3916_v59, %v4566_v25  ;;  %v1646_v12 = vmul.f32 %v3916_v59, %v4548_v49 }
 0x144   : > { %1719 = vmatpush1.msra.mxu0 %v4550_v50  ;;  %v1651_v50 = vmul.f32 %v3914_v56, %v4605_v33  ;;  %v1644_v33 = vmul.f32 %v3916_v59, %v4530_v35  ;;  %v1643_v10 = vmul.f32 %v3914_v56, %v4522_v29  ;;  %v1642_v44 = vmul.f32 %v3916_v59, %v4510_v11  ;;  %v1654_v35 = vld [vmem:[%s5340_s8 + $0xa0] sm:$0xff]  ;;  %v1657_v11 = vld [vmem:[%s5340_s8 + $0xb8] sm:$0xff]  ;;  %v1660_v29 = vld [vmem:[%s5340_s8 + $0xd0] sm:$0xff] }
 0x145   : > { %1720 = vmatprep.subr.mxu0 %v5440_v48  ;;  %v1641_v25 = vmul.f32 %v3914_v56, %v4502_v7  ;;  %v1640_v3 = vmul.f32 %v3916_v59, %v4493_v63  ;;  %v1639_v49 = vmul.f32 %v3914_v56, %v4518_v27  ;;  %v1638_v41 = vmul.f32 %v3916_v59, %v4506_v9  ;;  %v1656_v63 = vld [vmem:[%s5340_s8 + $0xb0] sm:$0xff]  ;;  %v1659_v7 = vld [vmem:[%s5340_s8 + $0xc8] sm:$0xff]  ;;  %v1658_v9 = vld [vmem:[%s5340_s8 + $0xc0] sm:$0xff] }
 0x146   : > { %1721 = vmatpush1.msra.mxu0 %v5441_v43  ;;  %v1661_v27 = vld [vmem:[%s5340_s8 + $0xd8] sm:$0xff]  ;;  %2699 = vperm.xlu0 %3886, %v5452_v16  }
 0x147   : > { %1722 = vmatprep.subr.mxu0 %v5442_v39 }
 0x148   : > { %1723 = vmatpush1.msra.mxu0 %v5443_v52 }
 0x149   : > { %1724 = vmatprep.subr.mxu0 %v5444_v34 }
 0x14a   : > { %1725 = vmatpush1.msra.mxu0 %v5445_v47  ;;  %v5456_v47 = vld [vmem:[#allocation16_spill] sm:$0xff] }
 0x14b   : > { %1726 = vmatprep.subr.mxu0 %v5446_v60 }
 0x14c   : > { %1727 = vmatpush1.msra.mxu0 %v5447_v20 }
 0x14d   : > { %1728 = vmatprep.subr.mxu0 %v5448_v23 }
 0x14e   : > { %1729 = vmatpush1.msra.mxu0 %v5449_v37 }
 0x14f   : > { %1746 = vmatprep.subr.mxu0 %v1653_v6 }
 0x150   : > { %1747 = vmatpush2.msra.mxu0 %v1652_v13  ;;  %v4061_v13 = vmov 6  }
 0x151   : > { %1748 = vmatprep.subr.mxu0 %v1651_v50  ;;  %3888 = vset.pattern.permute.xlu1 %v4061_v13 }
 0x152   : > { %1749 = vmatpush2.msra.mxu0 %v1650_v54  ;;  %1836 = vperm.xlu1 %3888, %v5451_v22   ;;  %v1372_v54 = vpop.permute.xlu0 %1371 }
 0x153   : > { %1750 = vmatprep.subr.mxu0 %v1649_v53 }
 0x154   : > { %1751 = vmatpush2.msra.mxu0 %v1648_v58 }
 0x155   : > { %1752 = vmatprep.subr.mxu0 %v1647_v31 }
 0x156   : > { %1753 = vmatpush2.msra.mxu0 %v1646_v12  ;;  %1832 = vperm.xlu1 %3888, %v5450_v40  }
 0x157   : > { %1754 = vmatprep.subr.mxu0 %v1645_v38 }
 0x158   : > { %1755 = vmatpush2.msra.mxu0 %v1644_v33 }
 0x159   : > { %1756 = vmatprep.subr.mxu0 %v1643_v10 }
 0x15a   : > { %1757 = vmatpush2.msra.mxu0 %v1642_v44 }
 0x15b   : > { %1758 = vmatprep.subr.mxu0 %v1641_v25  ;;  %v1098_v25 = vld [vmem:[%s5340_s8 + $0x40] sm:$0xff] }
 0x15c   : > { %1759 = vmatpush2.msra.mxu0 %v1640_v3 }
 0x15d   : > { %1760 = vmatprep.subr.mxu0 %v1639_v49 }
 0x15e   : > { %1761 = vmatpush2.msra.mxu0 %v1638_v41  ;;  %v1099_v41 = vld [vmem:[%s5340_s8 + $0x50] sm:$0xff] }
 0x15f   : > { %1763 = vmatmul.mubr.f32.vlgmr.msra.gmra.mxu0 %v1654_v35  ;;  %v4062_v35 = vmov 9  }
 0x160   : > { %3710 = vmatprep.mubr.msk.f32.mxu0 %vm1130_vm14, %v1657_v11  ;;  %3890 = vset.pattern.permute.xlu1 %v4062_v35  ;;  %v1100_v11 = vld [vmem:[%s5340_s8 + $0x60] sm:$0xff] }
 0x161   : > { %3889 = vset.pattern.permute.xlu0 %v4062_v35  ;;  %2358 = vperm.xlu1 %3890, %v5450_v40  }
 0x162   : > { %2362 = vperm.xlu0 %3889, %v5451_v22  }
 0x163   : > { %1769 = vmatmul.mubr.f32.gmra.mxu0 %v1656_v63  ;;  %v1101_v63 = vld [vmem:[%s5340_s8 + $0x70] sm:$0x1f] }
 0x164   : > { %3711 = vmatprep.mubr.msk.f32.mxu0 %vm1130_vm14, %v1659_v7  ;;  %v1366_v7 = vld [vmem:[%s5340_s8 + $0x90] sm:$0x7] }
 0x165   : > { %2354 = vperm.xlu1 %3890, %v5453_v0  }
 0x166   : > { %3891 = vset.pattern.permute.xlu0 %v4061_v13 }
 0x167   : > { %1775 = vmatmul.mubr.f32.gmra.mxu0 %v1658_v9  ;;  %1828 = vperm.xlu0 %3891, %v5453_v0   ;;  %v5457_v0 = vld [vmem:[#allocation18_spill] sm:$0xff] }
 0x168   : > { %3712 = vmatprep.mubr.msk.f32.mxu0 %vm1130_vm14, %v1661_v27  ;;  %v1683_v51 = vmul.f32 %v5457_v0, %v4721_v57 }
 0x169   : > { %3892 = vset.pattern.permute.xlu1 %v4061_v13 }
 0x16a   : > { %1824 = vperm.xlu1 %3892, %v5452_v16  }
 0x16b   : > { %1781 = vmatmul.mubr.f32.gmra.mxu0 %v1660_v29  ;;  %3893 = vset.pattern.permute.xlu0 %v4062_v35  ;;  %v1813_v35 = vld [vmem:[%s5340_s8 + $0x100] sm:$0xff] }
 0x16c   : > { %2441 = vmatprep.mubr.f32.mxu0 %v5439_v17  ;;  %2350 = vperm.xlu0 %3893, %v5452_v16   ;;  %v1682_v16 = vmul.f32 %v5457_v0, %v4724_v5 }
 0x1df   : > { %v1209_v18 = vpop.f32.mrf.mxu0 }
 0x1e0   : > { %v1210_v53 = vadd.f32 %v1209_v18, %v1113_v21  ;;  %v5458_v18 = vld [vmem:[#allocation17_spill] sm:$0xff] }
 0x1e1   : > { %v1211_v55 = vpop.f32.mrf.mxu0  ;;  %v1685_v1 = vmul.f32 %v5458_v18, %v4721_v57 }
 0x1e2   : > { %v1212_v37 = vadd.f32 %v1211_v55, %v1113_v21  ;;  %v1232_v44 = vmax.f32 %v1210_v53, 0.0  ;;  %v1684_v55 = vmul.f32 %v5458_v18, %v4724_v5  ;;  %v1679_v21 = vmul.f32 %v5460_v8, %v4721_v57 }
 0x1e3   : > { %v1215_v61 = vpop.f32.mrf.mxu0 }
 0x1e4   : > { %v1216_v20 = vadd.f32 %v1215_v61, %v5456_v47  ;;  %v1233_v10 = vmax.f32 %v1212_v37, 0.0  ;;  %v1801_v61 = vpop.permute.xlu0 %1800 }
 0x1e5   : > { %v1217_v45 = vpop.f32.mrf.mxu0 }
 0x1e6   : > { %v1218_v59 = vadd.f32 %v1217_v45, %v5456_v47  ;;  %v1234_v38 = vmax.f32 %v1216_v20, 0.0  ;;  %v1681_v45 = vmul.f32 %v5459_v46, %v4721_v57  ;;  %v5462_v57 = vld [vmem:[#allocation35_spill] sm:$0xff] }
 0x1e7   : > { %v1221_v14 = vpop.f32.mrf.mxu0  ;;  %v2164_v46 = vld [vmem:[%s5340_s8 + $0x1c0] sm:$0xff] }
 0x1e8   : > { %v1222_v34 = vadd.f32 %v1221_v14, %v1123_v42  ;;  %v1235_v31 = vmax.f32 %v1218_v59, 0.0 }
 0x1e9   : > { %v1223_v2 = vpop.f32.mrf.mxu0 }
 0x1ea   : > { %v1224_v39 = vadd.f32 %v1223_v2, %v1123_v42  ;;  %v1236_v58 = vmax.f32 %v1222_v34, 0.0 }
 0x1eb   : > { %v1227_v15 = vpop.f32.mrf.mxu0 }
 0x1ec   : > { %v1228_v48 = vadd.f32 %v1227_v15, %v5455_v26  ;;  %v1237_v50 = vmax.f32 %v1224_v39, 0.0 }
 0x1ed   : > { %v1229_v43 = vpop.f32.mrf.mxu0 }
 0x1ee   : > { %v1230_v52 = vadd.f32 %v1229_v43, %v5455_v26  ;;  %v1238_v23 = vmax.f32 %v1228_v48, 0.0  ;;  %v1678_v43 = vmul.f32 %v5460_v8, %v4724_v5 }
 0x1ef   : > { %v1451_v56 = vpop.f32.mrf.mxu0 }
 0x1f0   : > { %v1239_v60 = vmax.f32 %v1230_v52, 0.0  ;;  %v1452_v33 = vadd.f32 %v1451_v56, %v1372_v54  ;;  %v5461_v56 = vld [vmem:[#allocation31_spill] sm:$0xff] }
 0x1f1   : > { %v1453_v6 = vpop.f32.mrf.mxu0 }
 0x1f2   : > { %1301 = vmatprep.subr.mxu1 %v1239_v60  ;;  %v1454_v12 = vadd.f32 %v1453_v6, %v1372_v54  ;;  %v1456_v49 = vmax.f32 %v1452_v33, 0.0  ;;  %v1793_v60 = vpop.permute.xlu0 %1792 }
 0x1f3   : > { %1302 = vmatpush1.msra.mxu1 %v1238_v23 }
 0x1f4   : > { %1303 = vmatprep.subr.mxu1 %v1237_v50  ;;  %v1457_v3 = vmax.f32 %v1454_v12, 0.0 }
 0x1f5   : > { %1304 = vmatpush1.msra.mxu1 %v1236_v58 }
 0x1f6   : > { %1305 = vmatprep.subr.mxu1 %v1235_v31 }
 0x1f7   : > { %1306 = vmatpush1.msra.mxu1 %v1234_v38  ;;  %v1629_v38 = vadd.f32 1e-08, %v4646_v19 }
 0x1f8   : > { %1307 = vmatprep.subr.mxu1 %v1233_v10 }
 0x1f9   : > { %1308 = vmatpush1.msra.mxu1 %v1232_v44  ;;  %v1811_v44 = vld [vmem:[%s5340_s8 + $0xe0] sm:$0xff]  ;;  %3917 = vrcp.f32 %v1629_v38 }
 0x1fa   : > { %3706 = vmatprep.subr.msk.mxu1 %vm1378_vm9, %v1457_v3  ;;  %3699 = vmatmul.mubr.msk.f32.vlgmr.msra.gmra.mxu1 %vm1264_vm4, %v1098_v25  ;;  %v5463_v25 = vld [vmem:[#allocation22_spill] sm:$0xff]  ;;  %v5464_v3 = vld [vmem:[#allocation20_spill] sm:$0xff] }
 0x1fb   : > { %3707 = vmatpush1.msk.msra.mxu1 %vm1378_vm9, %v1456_v49  ;;  %1347 = vmatprep.mubr.f32.mxu1 %v5439_v17  ;;  %v1812_v49 = vld [vmem:[%s5340_s8 + $0xf0] sm:$0xff] }
 0x1fe   : > { %3700 = vmatmul.mubr.msk.f32.gmra.mxu1 %vm1264_vm4, %v1099_v41  ;;  %v5465_v41 = vld [vmem:[#allocation21_spill] sm:$0xff] }
 0x1ff   : > { %1353 = vmatprep.mubr.f32.mxu1 %v5439_v17 }
 0x202   : > { %3701 = vmatmul.mubr.msk.f32.gmra.mxu1 %vm1264_vm4, %v1100_v11  ;;  %v1814_v11 = vld [vmem:[%s5340_s8 + $0x110] sm:$0xff] }
 0x203   : > { %1359 = vmatprep.mubr.f32.mxu1 %v5439_v17 }
 0x206   : > { %3702 = vmatmul.mubr.msk.f32.gmra.mxu1 %vm1264_vm4, %v1101_v63  ;;  %v5466_v63 = vld [vmem:[#allocation37_spill] sm:$0xff] }
 0x207   : > { %1535 = vmatprep.mubr.f32.mxu1 %v5439_v17 }
 0x20a   : > { %3708 = vmatmul.mubr.msk.f32.vlgmr.msra.gmra.mxu1 %vm1374_vm15, %v1366_v7  ;;  %v1628_v7 = vadd.f32 1e-08, %v5466_v63 }
 0x20b   : > { %1915 = vmatprep.mubr.f32.mxu1 %v5439_v17 }
 0x20c   : > { %3919 = vrcp.f32 %v1628_v7 }
 0x21f   : > { %v1764_v9 = vpop.f32.mrf.mxu0 }
 0x220   : > { %v1765_v20 = vadd.f32 %v1764_v9, %v1678_v43  ;;  %v3918_v9 = vpop.eup %3917 }
 0x221   : > { %v1766_v27 = vpop.f32.mrf.mxu0  ;;  %v3920_v0 = vpop.eup %3919 }
 0x222   : > { %v1767_v34 = vadd.f32 %v1766_v27, %v1679_v21  ;;  %v1803_v5 = vadd.f32 %v5462_v57, %v1765_v20  ;;  %v1944_v27 = vld [vmem:[%s5340_s8 + $0x160] sm:$0xff]  ;;  %v1632_v18 = vmul.f32 %v3920_v0, %v4436_v24  ;;  %v1943_v24 = vld [vmem:[%s5340_s8 + $0x150] sm:$0xff] }
 0x223   : > { %v1770_v29 = vpop.f32.mrf.mxu0  ;;  %v2478_v20 = vld [vmem:[%s5340_s8 + $0x260] sm:$0xff] }
 0x224   : > { %v1771_v39 = vadd.f32 %v1770_v29, %v1680_v32  ;;  %v1804_v54 = vadd.f32 %v5462_v57, %v1767_v34  ;;  %v1815_v10 = vmax.f32 %v1803_v5, 0.0  ;;  %v1633_v29 = vmul.f32 %v3918_v9, %v4446_v28  ;;  %v1946_v28 = vld [vmem:[%s5340_s8 + $0x180] sm:$0xff] }
 0x225   : > { %v1772_v4 = vpop.f32.mrf.mxu0 }
 0x226   : > { %v1773_v26 = vadd.f32 %v1772_v4, %v1681_v45  ;;  %v1805_v37 = vadd.f32 %v1793_v60, %v1771_v39  ;;  %v1816_v33 = vmax.f32 %v1804_v54, 0.0  ;;  %v5467_v4 = vld [vmem:[#allocation19_spill] sm:$0xff]  ;;  %v2165_v45 = vld [vmem:[%s5340_s8 + $0x1d0] sm:$0xff] }
 0x227   : > { %v1776_v40 = vpop.f32.mrf.mxu0 }
 0x228   : > { %v1777_v2 = vadd.f32 %v1776_v40, %v1682_v16  ;;  %v1806_v6 = vadd.f32 %v1793_v60, %v1773_v26  ;;  %v1817_v12 = vmax.f32 %v1805_v37, 0.0  ;;  %v1945_v40 = vld [vmem:[%s5340_s8 + $0x170] sm:$0xff]  ;;  %v2162_v16 = vld [vmem:[%s5340_s8 + $0x1a0] sm:$0xff] }
 0x229   : > { %v1778_v22 = vpop.f32.mrf.mxu0 }
 0x22a   : > { %v1779_v42 = vadd.f32 %v1778_v22, %v1683_v51  ;;  %v1807_v23 = vadd.f32 %v5461_v56, %v1777_v2  ;;  %v1818_v31 = vmax.f32 %v1806_v6, 0.0  ;;  %v1947_v22 = vld [vmem:[%s5340_s8 + $0x190] sm:$0xff]  ;;  %v1940_v51 = vld [vmem:[%s5340_s8 + $0x120] sm:$0xff] }
 0x22b   : > { %v1782_v30 = vpop.f32.mrf.mxu0  ;;  %v2480_v6 = vld [vmem:[%s5340_s8 + $0x280] sm:$0xff] }
 0x22c   : > { %v1783_v14 = vadd.f32 %v1782_v30, %v1684_v55  ;;  %v1808_v47 = vadd.f32 %v5461_v56, %v1779_v42  ;;  %v1819_v58 = vmax.f32 %v1807_v23, 0.0  ;;  %v1941_v55 = vld [vmem:[%s5340_s8 + $0x130] sm:$0xff]  ;;  %v4963_v42 = vpop.permute.xlu1 %2282 }
 0x22d   : > { %v1784_v15 = vpop.f32.mrf.mxu0  ;;  %v2163_v30 = vld [vmem:[%s5340_s8 + $0x1b0] sm:$0xff] }
 0x22e   : > { %v1785_v48 = vadd.f32 %v1784_v15, %v1685_v1  ;;  %v1809_v52 = vadd.f32 %v1801_v61, %v1783_v14  ;;  %v1820_v53 = vmax.f32 %v1808_v47, 0.0  ;;  %v2479_v23 = vld [vmem:[%s5340_s8 + $0x270] sm:$0xff] }
 0x230   : > { %v1810_v59 = vadd.f32 %v1801_v61, %v1785_v48  ;;  %v1821_v50 = vmax.f32 %v1809_v52, 0.0  ;;  %v1942_v61 = vld [vmem:[%s5340_s8 + $0x140] sm:$0xff]  ;;  %v4965_v14 = vpop.permute.xlu1 %2322 }
 0x232   : > { %v1822_v13 = vmax.f32 %v1810_v59, 0.0 }
 0x234   : > { %1875 = vmatprep.subr.mxu1 %v1822_v13  ;;  %v4967_v1 = vpop.permute.xlu1 %2314  ;;  %v2481_v13 = vld [vmem:[%s5340_s8 + $0x290] sm:$0xff] }
 0x235   : > { %1876 = vmatpush1.msra.mxu1 %v1821_v50 }
 0x236   : > { %1877 = vmatprep.subr.mxu1 %v1820_v53 }
 0x237   : > { %1878 = vmatpush1.msra.mxu1 %v1819_v58 }
 0x238   : > { %1879 = vmatprep.subr.mxu1 %v1818_v31  ;;  %v4975_v8 = vpop.permute.xlu1 %1256 }
 0x239   : > { %1880 = vmatpush1.msra.mxu1 %v1817_v12 }
 0x23a   : > { %1881 = vmatprep.subr.mxu1 %v1816_v33 }
 0x23b   : > { %1882 = vmatpush1.msra.mxu1 %v1815_v10 }
 0x23c   : > { %3713 = vmatmul.mubr.msk.f32.vlgmr.msra.gmra.mxu1 %vm1264_vm4, %v1811_v44  ;;  %3717 = vmatprep.subr.msk.mxu1 %vm1378_vm9, %v5463_v25  ;;  %v4983_v43 = vpop.permute.xlu1 %1251 }
 0x23d   : > { %3718 = vmatpush1.msk.msra.mxu1 %vm1378_vm9, %v5464_v3  ;;  %1921 = vmatprep.mubr.f32.mxu1 %v5439_v17 }
 0x23e   : > { %3723 = vmatprep.subr.msk.mxu1 %vm1378_vm9, %v5465_v41 }
 0x240   : > { %3714 = vmatmul.mubr.msk.f32.gmra.mxu1 %vm1264_vm4, %v1812_v49  ;;  %v1460_v56 = vpop.permute.xlu1 %1459 }
 0x241   : > { %1927 = vmatprep.mubr.f32.mxu1 %v5439_v17 }
 0x244   : > { %3715 = vmatmul.mubr.msk.f32.gmra.mxu1 %vm1264_vm4, %v1813_v35 }
 0x245   : > { %1933 = vmatprep.mubr.f32.mxu1 %v5439_v17 }
 0x248   : > { %3716 = vmatmul.mubr.msk.f32.gmra.mxu1 %vm1264_vm4, %v1814_v11 }
 0x249   : > { %2030 = vmatprep.mubr.f32.mxu1 %v5439_v17 }
 0x24c   : > { %3719 = vmatmul.mubr.msk.f32.vlgmr.msra.gmra.mxu1 %vm1374_vm15, %v1944_v27 }
 0x24d   : > { %3724 = vmatpush1.msk.msra.mxu1 %vm1378_vm9, %v5467_v4  ;;  %2036 = vmatprep.mubr.f32.mxu1 %v5439_v17 }
 0x24e   : > { %3729 = vmatprep.subr.msk.mxu1 %vm1378_vm9, %v1633_v29 }
 0x250   : > { %3720 = vmatmul.mubr.msk.f32.gmra.mxu1 %vm1374_vm15, %v1945_v40 }
 0x251   : > { %2042 = vmatprep.mubr.f32.mxu1 %v5439_v17 }
 0x254   : > { %3721 = vmatmul.mubr.msk.f32.gmra.mxu1 %vm1374_vm15, %v1946_v28 }
 0x255   : > { %2048 = vmatprep.mubr.f32.mxu1 %v5439_v17 }
 0x258   : > { %3722 = vmatmul.mubr.msk.f32.gmra.mxu1 %vm1374_vm15, %v1947_v22 }
 0x259   : > { %2137 = vmatprep.mubr.f32.mxu1 %v5439_v17 }
 0x25c   : > { %3725 = vmatmul.mubr.msk.f32.vlgmr.msra.gmra.mxu1 %vm1374_vm15, %v1940_v51 }
 0x25d   : > { %3730 = vmatpush1.msk.msra.mxu1 %vm1378_vm9, %v1632_v18  ;;  %2143 = vmatprep.mubr.f32.mxu1 %v5439_v17  ;;  %v2295_v18 = vpop.permute.xlu0 %2294 }
 0x260   : > { %3726 = vmatmul.mubr.msk.f32.gmra.mxu1 %vm1374_vm15, %v1941_v55 }
 0x261   : > { %2149 = vmatprep.mubr.f32.mxu1 %v5439_v17 }
 0x264   : > { %3727 = vmatmul.mubr.msk.f32.gmra.mxu1 %vm1374_vm15, %v1942_v61 }
 0x265   : > { %2155 = vmatprep.mubr.f32.mxu1 %v5439_v17 }
 0x268   : > { %3728 = vmatmul.mubr.msk.f32.gmra.mxu1 %vm1374_vm15, %v1943_v24 }
 0x269   : > { %2248 = vmatprep.mubr.f32.mxu1 %v5439_v17 }
 0x26c   : > { %3731 = vmatmul.mubr.msk.f32.vlgmr.msra.gmra.mxu1 %vm1374_vm15, %v2162_v16 }
 0x26d   : > { %2254 = vmatprep.mubr.f32.mxu1 %v5439_v17 }
 0x270   : > { %3732 = vmatmul.mubr.msk.f32.gmra.mxu1 %vm1374_vm15, %v2163_v30 }
 0x271   : > { %2260 = vmatprep.mubr.f32.mxu1 %v5439_v17 }
 0x274   : > { %3733 = vmatmul.mubr.msk.f32.gmra.mxu1 %vm1374_vm15, %v2164_v46 }
 0x275   : > { %2266 = vmatprep.mubr.f32.mxu1 %v5439_v17 }
 0x278   : > { %3734 = vmatmul.mubr.msk.f32.gmra.mxu1 %vm1374_vm15, %v2165_v45  ;;  %v2303_v45 = vmul.f32 %v2295_v18, %v5466_v63 }
 0x279   : > { %2564 = vmatprep.mubr.f32.mxu1 %v5439_v17 }
 0x2ba   : > { %v4969_v32 = vpop.f32.mrf.mxu1 }
 0x2bc   : > { %v4971_v2 = vpop.f32.mrf.mxu1 }
 0x2be   : > { %v4973_v15 = vpop.f32.mrf.mxu1 }
 0x2c0   : > { %v4977_v21 = vpop.f32.mrf.mxu1 }
 0x2c2   : > { %v4979_v26 = vpop.f32.mrf.mxu1 }
 0x2c4   : > { %v4981_v48 = vpop.f32.mrf.mxu1 }
 0x2c6   : > { %v4985_v39 = vpop.f32.mrf.mxu1 }
 0x2c8   : > { %v4987_v52 = vpop.f32.mrf.mxu1 }
 0x2ca   : > { %v1537_v34 = vpop.f32.mrf.mxu1 }
 0x2cb   : > { %v1538_v47 = vadd.f32 %v1537_v34, %v1460_v56 }
 0x2cc   : > { %v1539_v59 = vpop.f32.mrf.mxu1 }
 0x2cd   : > { %v1540_v60 = vadd.f32 %v1539_v59, %v1460_v56 }
 0x2cf   : > { %3739 = vmatprep.subr.msk.mxu1 %vm1378_vm9, %v1540_v60 }
 0x2d0   : > { %3740 = vmatpush1.msk.msra.mxu1 %vm1378_vm9, %v1538_v47 }
 0x2d1   : > { %3741 = vmatmul.mubr.msk.f32.vlgmr.msra.gmra.mxu1 %vm1374_vm15, %v2478_v20 }
 0x2d2   : > { %2570 = vmatprep.mubr.f32.mxu1 %v5439_v17 }
 0x2d5   : > { %3742 = vmatmul.mubr.msk.f32.gmra.mxu1 %vm1374_vm15, %v2479_v23 }
 0x2d6   : > { %2576 = vmatprep.mubr.f32.mxu1 %v5439_v17 }
 0x2d9   : > { %3743 = vmatmul.mubr.msk.f32.gmra.mxu1 %vm1374_vm15, %v2480_v6  ;;  %v2304_v6 = vmul.f32 %v2295_v18, %v4646_v19 }
 0x2da   : > { %2582 = vmatprep.mubr.f32.mxu1 %v5439_v17 }
 0x2dd   : > { %3744 = vmatmul.mubr.msk.f32.gmra.mxu1 %vm1374_vm15, %v2481_v13  ;;  %v2327_v13 = vpop.permute.xlu0 %2326 }
 0x2de   : > { %2876 = vmatprep.mubr.f32.mxu1 %v5439_v17 }
 0x2fc   : > { %v5011_v37 = vpop.f32.mrf.mxu1 }
 0x2fe   : > { %v5013_v50 = vpop.f32.mrf.mxu1 }
 0x300   : > { %v5015_v57 = vpop.f32.mrf.mxu1 }
 0x301   : > { %5468 = vst [vmem:[#allocation36_spill] sm:$0xff] %v5015_v57 }
 0x302   : > { %v5017_v54 = vpop.f32.mrf.mxu1 }
 0x303   : > { %5469 = vst [vmem:[#allocation34_spill] sm:$0xff] %v5017_v54 }
 0x304   : > { %v5019_v53 = vpop.f32.mrf.mxu1 }
 0x306   : > { %v5021_v5 = vpop.f32.mrf.mxu1 }
 0x308   : > { %v5023_v58 = vpop.f32.mrf.mxu1 }
 0x30a   : > { %v5025_v31 = vpop.f32.mrf.mxu1 }
 0x30c   : > { %v2032_v12 = vpop.f32.mrf.mxu1 }
 0x30e   : > { %v2034_v38 = vpop.f32.mrf.mxu1 }
 0x310   : > { %v2038_v33 = vpop.f32.mrf.mxu1 }
 0x312   : > { %v2040_v10 = vpop.f32.mrf.mxu1 }
 0x314   : > { %v2044_v44 = vpop.f32.mrf.mxu1 }
 0x316   : > { %v2046_v25 = vpop.f32.mrf.mxu1 }
 0x318   : > { %v2050_v3 = vpop.f32.mrf.mxu1 }
 0x31a   : > { %v2052_v49 = vpop.f32.mrf.mxu1 }
 0x31c   : > { %v2139_v41 = vpop.f32.mrf.mxu1 }
 0x31d   : > { %v2140_v57 = vadd.f32 %v2139_v41, %v2032_v12  ;;  %v5471_v12 = vld [vmem:[#allocation39_spill] sm:$0xff] }
 0x31e   : > { %v2141_v35 = vpop.f32.mrf.mxu1 }
 0x31f   : > { %v2142_v59 = vadd.f32 %v2141_v35, %v2034_v38  ;;  %v2298_v38 = vmul.f32 %v4963_v42, %v4646_v19 }
 0x320   : > { %v2145_v11 = vpop.f32.mrf.mxu1 }
 0x321   : > { %v2146_v34 = vadd.f32 %v2145_v11, %v2038_v33  ;;  %v2297_v11 = vmul.f32 %v4963_v42, %v5466_v63 }
 0x322   : > { %v2147_v7 = vpop.f32.mrf.mxu1 }
 0x323   : > { %v2148_v16 = vadd.f32 %v2147_v7, %v2040_v10 }
 0x324   : > { %v2151_v9 = vpop.f32.mrf.mxu1 }
 0x325   : > { %v2152_v61 = vadd.f32 %v2151_v9, %v2044_v44 }
 0x326   : > { %v2153_v27 = vpop.f32.mrf.mxu1 }
 0x327   : > { %v2154_v55 = vadd.f32 %v2153_v27, %v2046_v25  ;;  %v5470_v27 = vld [vmem:[#allocation38_spill] sm:$0xff] }
 0x328   : > { %v2157_v29 = vpop.f32.mrf.mxu1 }
 0x329   : > { %v2158_v30 = vadd.f32 %v2157_v29, %v2050_v3 }
 0x32a   : > { %v2159_v4 = vpop.f32.mrf.mxu1 }
 0x32b   : > { %v2160_v60 = vadd.f32 %v2159_v4, %v2052_v49 }
 0x32c   : > { %v2250_v40 = vpop.f32.mrf.mxu1 }
 0x32d   : > { %v2273_v9 = vadd.f32 %v2250_v40, %v2140_v57 }
 0x32e   : > { %v2252_v28 = vpop.f32.mrf.mxu1 }
 0x32f   : > { %v2274_v44 = vadd.f32 %v2252_v28, %v2142_v59  ;;  %v2305_v57 = vadd.f32 %v2297_v11, %v2273_v9  ;;  %v5089_v59 = vpop.permute.xlu1 %2707 }
 0x330   : > { %v2256_v22 = vpop.f32.mrf.mxu1 }
 0x331   : > { %v2275_v54 = vadd.f32 %v2256_v22, %v2146_v34  ;;  %v2306_v4 = vadd.f32 %v2298_v38, %v2274_v44  ;;  %v2319_v22 = vpop.permute.xlu0 %2318  ;;  %v2329_v63 = vadd.f32 %v4967_v1, %v2305_v57 }
 0x332   : > { %v2258_v0 = vpop.f32.mrf.mxu1 }
 0x333   : > { %v2276_v20 = vadd.f32 %v2258_v0, %v2148_v16  ;;  %v2307_v41 = vadd.f32 %v5471_v12, %v2275_v54 }
 0x334   : > { %v2262_v51 = vpop.f32.mrf.mxu1 }
 0x335   : > { %v2277_v56 = vadd.f32 %v2262_v51, %v2152_v61  ;;  %v2308_v49 = vadd.f32 %v4654_v36, %v2276_v20  ;;  %v2331_v19 = vadd.f32 %v2319_v22, %v2307_v41  ;;  %v1262_v61 = vpop.permute.xlu0 %1261  ;;  %v3953_v20 = vld [vmem:[%s5341_s9 + $0x18] sm:$0xff] }
 0x336   : > { %v2264_v24 = vpop.f32.mrf.mxu1 }
 0x337   : > { %v2278_v46 = vadd.f32 %v2264_v24, %v2154_v55  ;;  %v2309_v33 = vadd.f32 %v5470_v27, %v2277_v56  ;;  %v2332_v51 = vadd.f32 %v2319_v22, %v2308_v49  ;;  %v2330_v55 = vadd.f32 %v4967_v1, %v2306_v4 }
 0x338   : > { %v2268_v47 = vpop.f32.mrf.mxu1  ;;  %v2343_v24 = vmax.f32 %v2331_v19, 0.0  ;;  %v1362_v1 = vadd.f32 %v4985_v39, %v1262_v61  ;;  %v1356_v56 = vadd.f32 %v4979_v26, %v4975_v8  ;;  %v1352_v39 = vadd.f32 %v4977_v21, %v4983_v43  ;;  %v2339_v26 = vld [vmem:[%s5340_s8 + $0x200] sm:$0xff] }
 0x339   : > { %v2279_v23 = vadd.f32 %v2268_v47, %v2158_v30  ;;  %v2310_v10 = vadd.f32 %v4651_v62, %v2278_v46  ;;  %v2333_v40 = vadd.f32 %v4965_v14, %v2309_v33  ;;  %v2344_v54 = vmax.f32 %v2332_v51, 0.0  ;;  %v2337_v30 = vld [vmem:[%s5340_s8 + $0x1e0] sm:$0xff]  ;;  %v1247_v34 = vpop.permute.xlu0 %1246 }
 0x33a   : > { %v2270_v25 = vpop.f32.mrf.mxu1  ;;  %v2342_v16 = vmax.f32 %v2330_v55, 0.0  ;;  %v1364_v46 = vadd.f32 %v4987_v52, %v1262_v61  ;;  %v2338_v52 = vld [vmem:[%s5340_s8 + $0x1f0] sm:$0xff]  ;;  %v1346_v47 = vadd.f32 %v4971_v2, %v1247_v34  ;;  %v2476_v21 = vld [vmem:[%s5340_s8 + $0x240] sm:$0xff] }
 0x33b   : > { %v2311_v3 = vadd.f32 %v2303_v45, %v2279_v23  ;;  %v2280_v7 = vadd.f32 %v2270_v25, %v2160_v60  ;;  %v2334_v62 = vadd.f32 %v4965_v14, %v2310_v10  ;;  %v2345_v42 = vmax.f32 %v2333_v40, 0.0  ;;  %v2340_v2 = vld [vmem:[%s5340_s8 + $0x210] sm:$0xff]  ;;  %v3954_v23 = vld [vmem:[%s5341_s9 + $0x8] sm:$0xff]  ;;  %v3956_v25 = vld [vmem:[%s5341_s9] sm:$0xff] }
 0x33c   : > { %v2341_v14 = vmax.f32 %v2329_v63, 0.0  ;;  %v1358_v45 = vadd.f32 %v4981_v48, %v4975_v8  ;;  %v1350_v48 = vadd.f32 %v4973_v15, %v4983_v43  ;;  %v1344_v8 = vadd.f32 %v4969_v32, %v1247_v34  ;;  %v2474_v32 = vld [vmem:[%s5340_s8 + $0x220] sm:$0xff]  ;;  %v2475_v15 = vld [vmem:[%s5340_s8 + $0x230] sm:$0xff] }
 0x33d   : > { %v2312_v35 = vadd.f32 %v2304_v6, %v2280_v7  ;;  %v2335_v29 = vadd.f32 %v2327_v13, %v2311_v3  ;;  %v2346_v36 = vmax.f32 %v2334_v62, 0.0  ;;  %v2477_v43 = vld [vmem:[%s5340_s8 + $0x250] sm:$0xff]  ;;  %v4063_v60 = vmov 11   ;;  %v5105_v10 = vpop.permute.xlu0 %2711 }
 0x33e   : > { %3894 = vset.pattern.permute.xlu1 %v4063_v60  ;;  %3895 = vset.pattern.permute.xlu0 %v4063_v60  ;;  %v3955_v6 = vld [vmem:[%s5341_s9 + $0x10] sm:$0xff] }
 0x33f   : > { %v2336_v28 = vadd.f32 %v2327_v13, %v2312_v35  ;;  %v2347_v18 = vmax.f32 %v2335_v29, 0.0  ;;  %2797 = vperm.xlu1 %3894, %v3953_v20   ;;  %2789 = vperm.xlu0 %3895, %v3954_v23   ;;  %v2704_v13 = vpop.permute.xlu1 %2703 }
 0x341   : > { %v2348_v0 = vmax.f32 %v2336_v28, 0.0  ;;  %v2700_v7 = vpop.permute.xlu0 %2699 }
 0x343   : > { %2401 = vmatprep.subr.mxu0 %v2348_v0  ;;  %2793 = vperm.xlu1 %3894, %v3955_v6   ;;  %v5103_v44 = vpop.permute.xlu1 %1836 }
 0x344   : > { %2402 = vmatpush1.msra.mxu0 %v2347_v18 }
 0x345   : > { %2403 = vmatprep.subr.mxu0 %v2346_v36  ;;  %v5111_v27 = vpop.permute.xlu0 %2362 }
 0x346   : > { %2404 = vmatpush1.msra.mxu0 %v2345_v42 }
 0x347   : > { %2405 = vmatprep.subr.mxu0 %v2344_v54  ;;  %2785 = vperm.xlu1 %3894, %v3956_v25   ;;  %v5107_v3 = vpop.permute.xlu1 %1832 }
 0x348   : > { %2406 = vmatpush1.msra.mxu0 %v2343_v24 }
 0x349   : > { %2407 = vmatprep.subr.mxu0 %v2342_v16  ;;  %v5115_v38 = vpop.permute.xlu0 %1828 }
 0x34a   : > { %2408 = vmatpush1.msra.mxu0 %v2341_v14 }
 0x34b   : > { %3735 = vmatmul.mubr.msk.f32.vlgmr.msra.gmra.mxu0 %vm1264_vm4, %v2337_v30  ;;  %3745 = vmatprep.subr.msk.mxu0 %vm2602_vm5, %v1364_v46  ;;  %v5109_v9 = vpop.permute.xlu1 %2358 }
 0x34c   : > { %3746 = vmatpush1.msk.msra.mxu0 %vm2602_vm5, %v1362_v1  ;;  %2447 = vmatprep.mubr.f32.mxu0 %v5439_v17 }
 0x34d   : > { %2635 = vmatprep.subr.mxu0 %v1358_v45  ;;  %v2351_v35 = vpop.permute.xlu0 %2350 }
 0x34e   : > { %2636 = vmatpush1.msra.mxu0 %v1356_v56 }
 0x34f   : > { %3736 = vmatmul.mubr.msk.f32.gmra.mxu0 %vm1264_vm4, %v2338_v52  ;;  %2637 = vmatprep.subr.mxu0 %v1352_v39  ;;  %v5113_v33 = vpop.permute.xlu1 %2354 }
 0x350   : > { %2638 = vmatpush1.msra.mxu0 %v1350_v48  ;;  %2453 = vmatprep.mubr.f32.mxu0 %v5439_v17 }
 0x351   : > { %2639 = vmatprep.subr.mxu0 %v1346_v47 }
 0x352   : > { %2640 = vmatpush1.msra.mxu0 %v1344_v8 }
 0x353   : > { %3737 = vmatmul.mubr.msk.f32.gmra.mxu0 %vm1264_vm4, %v2339_v26  ;;  %v1825_v49 = vpop.permute.xlu1 %1824 }
 0x354   : > { %2459 = vmatprep.mubr.f32.mxu0 %v5439_v17  ;;  %v1918_v12 = vadd.f32 %v5011_v37, %v1825_v49  ;;  %v1920_v28 = vadd.f32 %v5013_v50, %v1825_v49 }
 0x357   : > { %3738 = vmatmul.mubr.msk.f32.gmra.mxu0 %vm1264_vm4, %v2340_v2 }
 0x358   : > { %2673 = vmatprep.mubr.f32.mxu0 %v5439_v17 }
 0x35b   : > { %3747 = vmatmul.mubr.msk.f32.vlgmr.msra.gmra.mxu0 %vm2589_vm6, %v2474_v32 }
 0x35c   : > { %2679 = vmatprep.mubr.f32.mxu0 %v5439_v17 }
 0x35f   : > { %3748 = vmatmul.mubr.msk.f32.gmra.mxu0 %vm2589_vm6, %v2475_v15 }
 0x360   : > { %2685 = vmatprep.mubr.f32.mxu0 %v5439_v17 }
 0x363   : > { %3749 = vmatmul.mubr.msk.f32.gmra.mxu0 %vm2589_vm6, %v2476_v21 }
 0x364   : > { %2691 = vmatprep.mubr.f32.mxu0 %v5439_v17 }
 0x367   : > { %3750 = vmatmul.mubr.msk.f32.gmra.mxu0 %vm2589_vm6, %v2477_v43 }
 0x368   : > { %2991 = vmatprep.mubr.f32.mxu0 %v5439_v17 }
 0x391   : > { %v2566_v4 = vpop.f32.mrf.mxu1 }
 0x393   : > { %v2568_v51 = vpop.f32.mrf.mxu1 }
 0x395   : > { %v2572_v37 = vpop.f32.mrf.mxu1 }
 0x397   : > { %v2574_v50 = vpop.f32.mrf.mxu1 }
 0x399   : > { %v2578_v54 = vpop.f32.mrf.mxu1 }
 0x39b   : > { %v2580_v14 = vpop.f32.mrf.mxu1 }
 0x39d   : > { %v2584_v48 = vpop.f32.mrf.mxu1 }
 0x39f   : > { %v2586_v23 = vpop.f32.mrf.mxu1 }
 0x40b   : > { %v2443_v11 = vpop.f32.mrf.mxu0 }
 0x40c   : > { %v2444_v41 = vadd.f32 %v2443_v11, %v2351_v35 }
 0x40d   : > { %v2445_v29 = vpop.f32.mrf.mxu0 }
 0x40e   : > { %v5119_v62 = vmul.f32 %v2444_v41, %v1918_v12  ;;  %v2446_v22 = vadd.f32 %v2445_v29, %v2351_v35 }
 0x40f   : > { %v5121_v57 = vpop.f32.mrf.mxu0 }
 0x410   : > { %v5123_v40 = vmul.f32 %v2446_v22, %v1920_v28 }
 0x411   : > { %v5125_v0 = vpop.f32.mrf.mxu0 }
 0x413   : > { %v5127_v19 = vpop.f32.mrf.mxu0 }
 0x415   : > { %v5129_v18 = vpop.f32.mrf.mxu0 }
 0x417   : > { %v5131_v36 = vpop.f32.mrf.mxu0 }
 0x419   : > { %v5133_v55 = vpop.f32.mrf.mxu0 }
 0x41b   : > { %v2675_v63 = vpop.f32.mrf.mxu0 }
 0x41c   : > { %v2676_v52 = vadd.f32 %v2675_v63, %v2566_v4 }
 0x41d   : > { %v2677_v42 = vpop.f32.mrf.mxu0 }
 0x41e   : > { %v2678_v61 = vadd.f32 %v2677_v42, %v2568_v51  ;;  %v2714_v60 = vadd.f32 %v2700_v7, %v2676_v52  ;;  %v2456_v52 = vadd.f32 %v5127_v19, %v5109_v9 }
 0x41f   : > { %v2681_v24 = vpop.f32.mrf.mxu0 }
 0x420   : > { %v2715_v30 = vadd.f32 %v2700_v7, %v2678_v61  ;;  %v2682_v1 = vadd.f32 %v2681_v24, %v2572_v37  ;;  %v3751_v41 = vmul.f32 -1.442695, %v2714_v60 }
 0x421   : > { %v2683_v16 = vpop.f32.mrf.mxu0 }
 0x422   : > { %v2684_v46 = vadd.f32 %v2683_v16, %v2574_v50  ;;  %v3752_v47 = vmul.f32 -1.442695, %v2715_v30  ;;  %v2716_v2 = vadd.f32 %v2704_v13, %v2682_v1  ;;  %v2464_v30 = vadd.f32 %v5133_v55, %v5111_v27 }
 0x423   : > { %v2687_v45 = vpop.f32.mrf.mxu0  ;;  %v1938_v1 = vadd.f32 %v5025_v31, %v5103_v44  ;;  %v1932_v55 = vadd.f32 %v5021_v5, %v5107_v3  ;;  %v1930_v31 = vadd.f32 %v5019_v53, %v5107_v3  ;;  %v5473_v5 = vld [vmem:[#allocation36_spill] sm:$0xff] }
 0x424   : > { %v2717_v34 = vadd.f32 %v2704_v13, %v2684_v46  ;;  %v2688_v56 = vadd.f32 %v2687_v45, %v2578_v54  ;;  %3921 = vpow2.f32 %v3752_v47  ;;  %v3753_v11 = vmul.f32 -1.442695, %v2716_v2 }
 0x425   : > { %v2689_v39 = vpop.f32.mrf.mxu0  ;;  %v2462_v46 = vadd.f32 %v5131_v36, %v5111_v27  ;;  %v2458_v45 = vadd.f32 %v5129_v18, %v5109_v9  ;;  %v2452_v27 = vadd.f32 %v5125_v0, %v5113_v33  ;;  %v2473_v36 = vmul.f32 %v2464_v30, %v1938_v1 }
 0x426   : > { %v2718_v8 = vadd.f32 %v5089_v59, %v2688_v56  ;;  %v2690_v26 = vadd.f32 %v2689_v39, %v2580_v14  ;;  %v3754_v32 = vmul.f32 -1.442695, %v2717_v34  ;;  %v1936_v56 = vadd.f32 %v5023_v58, %v5103_v44  ;;  %v5472_v44 = vld [vmem:[#allocation34_spill] sm:$0xff] }
 0x427   : > { %v2693_v15 = vpop.f32.mrf.mxu0  ;;  %v2450_v18 = vadd.f32 %v5121_v57, %v5113_v33  ;;  %v1926_v9 = vadd.f32 %v5472_v44, %v5115_v38  ;;  %v2471_v19 = vmul.f32 %v2458_v45, %v1932_v55  ;;  %v1924_v2 = vadd.f32 %v5473_v5, %v5115_v38  ;;  %v2778_v55 = vld [vmem:[%s5340_s8 + $0x2e0] sm:$0xff] }
 0x428   : > { %v2719_v21 = vadd.f32 %v5089_v59, %v2690_v26  ;;  %v2694_v43 = vadd.f32 %v2693_v15, %v2584_v48  ;;  %v3755_v20 = vmul.f32 -1.442695, %v2718_v8  ;;  %3923 = vpow2.f32 %v3754_v32  ;;  %v5474_v5 = vld [vmem:[#allocation8_spill] sm:$0xff] }
 0x429   : > { %v2695_v6 = vpop.f32.mrf.mxu0  ;;  %v2472_v47 = vmul.f32 %v2462_v46, %v1936_v56  ;;  %v2470_v0 = vmul.f32 %v2456_v52, %v1930_v31  ;;  %vm3012_vm7 = vcmp.lt.s32.totalorder %v5474_v5, 16  ;;  %vm3029_vm9 = vcmp.lt.s32.totalorder %v5474_v5, 32 }
 0x42a   : > { %v3756_v25 = vmul.f32 -1.442695, %v2719_v21  ;;  %v2720_v49 = vadd.f32 %v5105_v10, %v2694_v43  ;;  %v2696_v35 = vadd.f32 %v2695_v6, %v2586_v23  ;;  %v2469_v21 = vmul.f32 %v2452_v27, %v1926_v9  ;;  %v2780_v6 = vld [vmem:[%s5340_s8 + $0x2a0] sm:$0xff]  ;;  %v2779_v27 = vld [vmem:[%s5340_s8 + $0x2f0] sm:$0xff] }
 0x42b   : > { %v2468_v43 = vmul.f32 %v2450_v18, %v1924_v2  ;;  %vm3046_vm10 = vcmp.lt.s32.totalorder %v5474_v5, 64 }
 0x42c   : > { %3925 = vpow2.f32 %v3756_v25  ;;  %v3757_v12 = vmul.f32 -1.442695, %v2720_v49  ;;  %v2721_v13 = vadd.f32 %v5105_v10, %v2696_v35  ;;  %v2781_v25 = vld [vmem:[%s5340_s8 + $0x2b0] sm:$0xff]  ;;  %v5188_v49 = vld [vmem:[%s5341_s9 + $0x8] sm:$0xff]  ;;  %v4064_v35 = vmov 12  }
 0x42d   : > { %3927 = vpow2.f32 %v3755_v20  ;;  %3896 = vset.pattern.permute.xlu1 %v4064_v35  ;;  %3897 = vset.pattern.permute.xlu0 %v4064_v35 }
 0x42e   : > { %3929 = vpow2.f32 %v3757_v12  ;;  %v3758_v59 = vmul.f32 -1.442695, %v2721_v13  ;;  %2918 = vperm.xlu1 %3896, %v5188_v49  }
 0x42f   : > { %3931 = vpow2.f32 %v3753_v11  ;;  %v5194_v11 = vld [vmem:[%s5341_s9] sm:$0xff] }
 0x430   : > { %3933 = vpow2.f32 %v3758_v59  ;;  %2913 = vperm.xlu0 %3897, %v5194_v11   ;;  %v2798_v59 = vpop.permute.xlu1 %2797 }
 0x431   : > { %3935 = vpow2.f32 %v3751_v41  ;;  %v3922_v7 = vpop.eup %3921 }
 0x432   : > { %v2747_v16 = vadd.f32 1.0, %v3922_v7 }
 0x435   : > { %v3924_v29 = vpop.eup %3923 }
 0x436   : > { %v2749_v61 = vadd.f32 1.0, %v3924_v29 }
 0x439   : > { %v3926_v4 = vpop.eup %3925 }
 0x43a   : > { %v3928_v28 = vpop.eup %3927  ;;  %v2751_v22 = vadd.f32 1.0, %v3926_v4 }
 0x43b   : > { %v3930_v51 = vpop.eup %3929  ;;  %v2750_v42 = vadd.f32 1.0, %v3928_v28  ;;  %v2794_v28 = vpop.permute.xlu1 %2793 }
 0x43c   : > { %v3932_v37 = vpop.eup %3931  ;;  %v2752_v50 = vadd.f32 1.0, %v3930_v51  ;;  %3937 = vrcp.f32 %v2751_v22 }
 0x43d   : > { %v3934_v63 = vpop.eup %3933  ;;  %v2748_v24 = vadd.f32 1.0, %v3932_v37 }
 0x43e   : > { %v3936_v54 = vpop.eup %3935  ;;  %v2753_v10 = vadd.f32 1.0, %v3934_v63  ;;  %3939 = vrcp.f32 %v2752_v50  ;;  %v2790_v63 = vpop.permute.xlu0 %2789 }
 0x43f   : > { %v2746_v14 = vadd.f32 1.0, %v3936_v54 }
 0x440   : > { %3941 = vrcp.f32 %v2753_v10 }
 0x441   : > { %3943 = vrcp.f32 %v2750_v42 }
 0x442   : > { %3945 = vrcp.f32 %v2749_v61  ;;  %v2786_v61 = vpop.permute.xlu1 %2785 }
 0x443   : > { %3947 = vrcp.f32 %v2748_v24 }
 0x444   : > { %3949 = vrcp.f32 %v2747_v16 }
 0x445   : > { %3951 = vrcp.f32 %v2746_v14 }
 0x449   : > { %v3938_v34 = vpop.eup %3937 }
 0x44a   : > { %v2775_v53 = vmul.f32 %v3938_v34, %v2471_v19 }
 0x44b   : > { %v3940_v39 = vpop.eup %3939 }
 0x44c   : > { %v2776_v32 = vmul.f32 %v3940_v39, %v2472_v47 }
 0x44d   : > { %v3942_v48 = vpop.eup %3941 }
 0x44e   : > { %v3944_v58 = vpop.eup %3943  ;;  %v2777_v8 = vmul.f32 %v3942_v48, %v2473_v36 }
 0x44f   : > { %v3946_v26 = vpop.eup %3945  ;;  %v2774_v33 = vmul.f32 %v3944_v58, %v2470_v0 }
 0x450   : > { %v3948_v15 = vpop.eup %3947  ;;  %2836 = vmatprep.subr.mxu1 %v2777_v8  ;;  %v2773_v60 = vmul.f32 %v3946_v26, %v2469_v21 }
 0x451   : > { %v3950_v3 = vpop.eup %3949  ;;  %2837 = vmatpush1.msra.mxu1 %v2776_v32  ;;  %v2772_v20 = vmul.f32 %v3948_v15, %v2468_v43 }
 0x452   : > { %v3952_v57 = vpop.eup %3951  ;;  %2838 = vmatprep.subr.mxu1 %v2775_v53  ;;  %v2771_v23 = vmul.f32 %v3950_v3, %v5123_v40  ;;  %v2783_v40 = vld [vmem:[%s5340_s8 + $0x2d0] sm:$0xff] }
 0x453   : > { %2839 = vmatpush1.msra.mxu1 %v2774_v33  ;;  %v2770_v38 = vmul.f32 %v3952_v57, %v5119_v62  ;;  %v2782_v62 = vld [vmem:[%s5340_s8 + $0x2c0] sm:$0xff] }
 0x454   : > { %2840 = vmatprep.subr.mxu1 %v2773_v60 }
 0x455   : > { %2841 = vmatpush1.msra.mxu1 %v2772_v20 }
 0x456   : > { %2842 = vmatprep.subr.mxu1 %v2771_v23 }
 0x457   : > { %2843 = vmatpush1.msra.mxu1 %v2770_v38 }
 0x458   : > { %3759 = vmatmul.mubr.msk.f32.vlgmr.msra.gmra.mxu1 %vm1264_vm4, %v2780_v6  ;;  %3798 = vmatprep.subr.mxu1 %v5439_v17 }
 0x459   : > { %2882 = vmatprep.mubr.f32.mxu1 %v5439_v17 }
 0x45c   : > { %3760 = vmatmul.mubr.msk.f32.gmra.mxu1 %vm1264_vm4, %v2781_v25  ;;  %v3058_v25 = vld [vmem:[%s5340_s8 + $0x330] sm:$0xff] }
 0x45d   : > { %2888 = vmatprep.mubr.f32.mxu1 %v5439_v17 }
 0x460   : > { %3761 = vmatmul.mubr.msk.f32.gmra.mxu1 %vm1264_vm4, %v2782_v62 }
 0x461   : > { %2894 = vmatprep.mubr.f32.mxu1 %v5439_v17 }
 0x464   : > { %3762 = vmatmul.mubr.msk.f32.gmra.mxu1 %vm1264_vm4, %v2783_v40 }
 0x465   : > { %3802 = vmatprep.mubr.msk.f32.mxu1 %vm4070_vm11, %v5439_v17 }
 0x4a9   : > { %v2919_v47 = vpop.permute.xlu1 %2918 }
 0x4ab   : > { %v2914_v36 = vpop.permute.xlu0 %2913 }
 0x518   : > { %v2878_v12 = vpop.f32.mrf.mxu1 }
 0x519   : > { %v2879_v1 = vadd.f32 %v2878_v12, %v2786_v61 }
 0x51a   : > { %v2880_v13 = vpop.f32.mrf.mxu1 }
 0x51b   : > { %v2881_v30 = vadd.f32 %v2880_v13, %v2786_v61  ;;  %v2901_v39 = vmax.f32 %v2879_v1, 0.0  ;;  %v3334_v1 = vld [vmem:[%s5341_s9] sm:$0x1] }
 0x51c   : > { %v2884_v41 = vpop.f32.mrf.mxu1 }
 0x51d   : > { %v2885_v16 = vadd.f32 %v2884_v41, %v2790_v63  ;;  %v2902_v52 = vmax.f32 %v2881_v30, 0.0  ;;  %v3233_v30 = vld [vmem:[%s5340_s8 + $0x300] sm:$0xff] }
 0x51e   : > { %v2886_v7 = vpop.f32.mrf.mxu1 }
 0x51f   : > { %v2887_v10 = vadd.f32 %v2886_v7, %v2790_v63  ;;  %v2903_v56 = vmax.f32 %v2885_v16, 0.0 }
 0x520   : > { %v2890_v29 = vpop.f32.mrf.mxu1 }
 0x521   : > { %v2891_v54 = vadd.f32 %v2890_v29, %v2794_v28  ;;  %v2904_v34 = vmax.f32 %v2887_v10, 0.0  ;;  %v4068_v29 = vmov 15  }
 0x522   : > { %v2892_v4 = vpop.f32.mrf.mxu1  ;;  %3898 = vset.pattern.permute.xlu0 %v4068_v29  ;;  %3899 = vset.pattern.permute.xlu1 %v4068_v29 }
 0x523   : > { %v2893_v50 = vadd.f32 %v2892_v4, %v2794_v28  ;;  %v2905_v45 = vmax.f32 %v2891_v54, 0.0  ;;  %v4069_v4 = vmov 13  }
 0x524   : > { %v2896_v22 = vpop.f32.mrf.mxu1 }
 0x525   : > { %v2897_v51 = vadd.f32 %v2896_v22, %v2798_v59  ;;  %v2906_v46 = vmax.f32 %v2893_v50, 0.0 }
 0x526   : > { %v2898_v37 = vpop.f32.mrf.mxu1 }
 0x527   : > { %v2899_v42 = vadd.f32 %v2898_v37, %v2798_v59  ;;  %v2907_v14 = vmax.f32 %v2897_v51, 0.0 }
 0x529   : > { %v2908_v24 = vmax.f32 %v2899_v42, 0.0 }
 0x52b   : > { %2951 = vmatprep.subr.mxu0 %v2908_v24 }
 0x52c   : > { %2952 = vmatpush1.msra.mxu0 %v2907_v14 }
 0x52d   : > { %2953 = vmatprep.subr.mxu0 %v2906_v46  ;;  %v3234_v46 = vld [vmem:[%s5340_s8 + $0x310] sm:$0xff] }
 0x52e   : > { %2954 = vmatpush1.msra.mxu0 %v2905_v45  ;;  %v4071_v45 = vmov 14  }
 0x52f   : > { %2955 = vmatprep.subr.mxu0 %v2904_v34  ;;  %v3151_v34 = vld [vmem:[%s5341_s9] sm:$0x1] }
 0x530   : > { %2956 = vmatpush1.msra.mxu0 %v2903_v56  ;;  %v4072_v56 = vmov 16  }
 0x531   : > { %2957 = vmatprep.subr.mxu0 %v2902_v52 }
 0x532   : > { %2958 = vmatpush1.msra.mxu0 %v2901_v39 }
 0x533   : > { %3763 = vmatmul.mubr.msk.f32.vlgmr.msra.gmra.mxu0 %vm1264_vm4, %v2778_v55 }
 0x534   : > { %2997 = vmatprep.mubr.f32.mxu0 %v5439_v17 }
 0x537   : > { %3764 = vmatmul.mubr.msk.f32.gmra.mxu0 %vm1264_vm4, %v2779_v27 }
 0x538   : > { %3795 = vmatprep.mubr.msk.f32.mxu0 %vm585_vm8, %v3058_v25 }
 0x5f3   : > { %v2993_v48 = vpop.f32.mrf.mxu0 }
 0x5f4   : > { %v5206_v31 = vadd.f32 %v2993_v48, %v2914_v36 }
 0x5f5   : > { %v2995_v18 = vpop.f32.mrf.mxu0 }
 0x5f6   : > { %3004 = vrot.lane.b32.xlu0 %v5206_v31, %s4065_s30  ;;  %v5215_v8 = vadd.f32 %v2995_v18, %v2914_v36 }
 0x5f7   : > { %v2999_v58 = vpop.f32.mrf.mxu0 }
 0x5f8   : > { %v5209_v44 = vadd.f32 %v2999_v58, %v2919_v47  ;;  %v3057_v58 = vld [vmem:[%s5340_s8 + $0x350] ss:$0 sm:$0xff] }
 0x5f9   : > { %v3001_v9 = vpop.f32.mrf.mxu0 }
 0x5fa   : > { %3006 = vrot.lane.b32.xlu1 %v5209_v44, %s4065_s30  ;;  %v5212_v19 = vadd.f32 %v3001_v9, %v2919_v47 }
 0x5fe   : > { %3010 = vrot.lane.b32.xlu1 %v5212_v19, %s4065_s30 }
 0x602   : > { %3008 = vrot.lane.b32.xlu1 %v5215_v8, %s4065_s30  ;;  %s3473_s30 = sshll.u32 %s486_s12, 4  ;;  %s3474_s30 = int_to_ptr.vmem [resolvable:$true] %s3473_s30 }
 0x603   : > { %s3958_s0 = scalar_lea.vmem %s3474_s30, 16  ;;  %p3965_p0 = scmp.lt.s32.totalorder %s3474_s30, %s3963_s15 }
 0x604   : > { %p3959_p11 = scmp.ne.s32.totalorder %s3474_s30, %s3958_s0  ;;  %p3966_p1 = scmp.lt.s32.totalorder %s3964_s1, %s3958_s0 }
 0x606   : > { %p3960_p12 = pnand %p3959_p11, %p4174_p5  ;;  %p3967_p2 = por %p3966_p1, %p3965_p0 }
 0x608   : > { %p3961_p13 = pneg %p3960_p12 }
 0x60a   : > { %p3968_p3 = pnand %p3967_p2, %p3961_p13 }
 0x668   : > { %v3005_v53 = vpop.permute.xlu0 %3004 }
 0x66c   : > { %v3007_v26 = vpop.permute.xlu1 %3006 }
 0x670   : > { %v3011_v2 = vpop.permute.xlu1 %3010 }
 0x671   : > { %v3014_v0 = vsel %vm3012_vm7, %v3007_v26, %v3011_v2  ;;  %v3016_v32 = vsel %vm3012_vm7, %v3011_v2, %v3007_v26 }
 0x672   : > { %v3019_v15 = vmax.f32 %v5209_v44, %v3016_v32  ;;  %v3020_v21 = vmax.f32 %v5212_v19, %v3014_v0 }
 0x674   : > { %3027 = vrot.lane.b32.xlu1 %v3020_v21, %s4066_s25  ;;  %v3009_v3 = vpop.permute.xlu1 %3008  ;;  %3023 = vrot.lane.b32.xlu0 %v3019_v15, %s4066_s25 }
 0x675   : > { %v3013_v43 = vsel %vm3012_vm7, %v3005_v53, %v3009_v3  ;;  %v3015_v33 = vsel %vm3012_vm7, %v3009_v3, %v3005_v53 }
 0x676   : > { %v3017_v57 = vmax.f32 %v5206_v31, %v3015_v33  ;;  %v3018_v60 = vmax.f32 %v5215_v8, %v3013_v43  ;;  %v3232_v43 = vld [vmem:[%s5340_s8 + $0x320] ss:$0 sm:$0xff] }
 0x678   : > { %3021 = vrot.lane.b32.xlu0 %v3017_v57, %s4066_s25  ;;  %3025 = vrot.lane.b32.xlu1 %v3018_v60, %s4066_s25 }
 0x6e6   : > { %v3028_v20 = vpop.permute.xlu1 %3027  ;;  %v3024_v23 = vpop.permute.xlu0 %3023 }
 0x6e7   : > { %v3031_v38 = vsel %vm3029_vm9, %v3024_v23, %v3028_v20  ;;  %v3033_v6 = vsel %vm3029_vm9, %v3028_v20, %v3024_v23 }
 0x6e8   : > { %v3036_v62 = vmax.f32 %v3019_v15, %v3033_v6  ;;  %v3037_v40 = vmax.f32 %v3020_v21, %v3031_v38 }
 0x6ea   : > { %v3026_v35 = vpop.permute.xlu1 %3025  ;;  %3040 = vrot.lane.b32.xlu0 %v3036_v62, %s4067_s16  ;;  %3044 = vrot.lane.b32.xlu1 %v3037_v40, %s4067_s16  ;;  %v3022_v12 = vpop.permute.xlu0 %3021 }
 0x6eb   : > { %v3030_v13 = vsel %vm3029_vm9, %v3022_v12, %v3026_v35  ;;  %v3032_v41 = vsel %vm3029_vm9, %v3026_v35, %v3022_v12 }
 0x6ec   : > { %v3034_v59 = vmax.f32 %v3017_v57, %v3032_v41  ;;  %v3035_v7 = vmax.f32 %v3018_v60, %v3030_v13 }
 0x6ee   : > { %3038 = vrot.lane.b32.xlu0 %v3034_v59, %s4067_s16  ;;  %3042 = vrot.lane.b32.xlu1 %v3035_v7, %s4067_s16  ;;  %s3447_s16 = scalar_lea.sflag [#allocation5], %s5269_s14 }
 0x6f2   : > { %3065 = vperm.xlu0 %3898, %v5188_v49   ;;  %3061 = vperm.xlu1 %3899, %v5194_v11  }
 0x6f6   : > { %3900 = vset.pattern.permute.xlu1 %v4069_v4  ;;  %3901 = vset.pattern.permute.xlu0 %v4069_v4 }
 0x6f7   : > { %3244 = vperm.xlu1 %3900, %v5188_v49   ;;  %3239 = vperm.xlu0 %3901, %v5194_v11   ;;  %v3059_v11 = vld [vmem:[%s5340_s8 + $0x340] sm:$0xff] }
 0x6fb   : > { %3902 = vset.pattern.permute.xlu1 %v4071_v45  ;;  %3904 = vset.pattern.permute.xlu0 %v4071_v45 }
 0x6fc   : > { %3337 = vperm.xlu1 %3902, %v3334_v1  }
 0x700   : > { %3903 = vset.pattern.permute.xlu1 %v4072_v56 }
 0x701   : > { %3154 = vperm.xlu1 %3903, %v3151_v34  }
 0x75c   : > { %v3045_v28 = vpop.permute.xlu1 %3044  ;;  %v3041_v22 = vpop.permute.xlu0 %3040 }
 0x75d   : > { %v3048_v51 = vsel %vm3046_vm10, %v3041_v22, %v3045_v28  ;;  %v3050_v37 = vsel %vm3046_vm10, %v3045_v28, %v3041_v22 }
 0x75e   : > { %v3053_v50 = vmax.f32 %v3036_v62, %v3050_v37  ;;  %v3054_v63 = vmax.f32 %v3037_v40, %v3048_v51 }
 0x760   : > { %v3043_v42 = vpop.permute.xlu1 %3042  ;;  %v3039_v54 = vpop.permute.xlu0 %3038  ;;  %v3056_v61 = vmax.f32 %v3053_v50, %v3054_v63 }
 0x761   : > { %v3047_v10 = vsel %vm3046_vm10, %v3039_v54, %v3043_v42  ;;  %v3049_v24 = vsel %vm3046_vm10, %v3043_v42, %v3039_v54 }
 0x762   : > { %v3051_v16 = vmax.f32 %v3034_v59, %v3049_v24  ;;  %v3052_v14 = vmax.f32 %v3035_v7, %v3047_v10  ;;  %3791 = vmatprep.subr.mxu0 %v3056_v61 }
 0x763   : > { %3792 = vmatpush3.msra.mxu0 %v3056_v61 }
 0x764   : > { %v3055_v49 = vmax.f32 %v3051_v16, %v3052_v14 }
 0x766   : > { %3793 = vmatprep.subr.mxu0 %v3055_v49 }
 0x767   : > { %3794 = vmatpush3.msra.mxu0 %v3055_v49 }
 0x768   : > { %3281 = vmatprep.subr.mxu0 %v5212_v19  ;;  %3796 = vmatmul.mubr.msk.f32.vlgmr.msra.gmra.mxu0 %vm585_vm8, %v3059_v11 }
 0x769   : > { %3282 = vmatpush1.msra.mxu0 %v5209_v44  ;;  %3317 = vmatprep.mubr.f32.mxu0 %v5439_v17 }
 0x76a   : > { %3283 = vmatprep.subr.mxu0 %v5215_v8 }
 0x76b   : > { %3284 = vmatpush1.msra.mxu0 %v5206_v31 }
 0x76c   : > { %3768 = vmatmul.mubr.msk.f32.vlgmr.msra.gmra.mxu0 %vm585_vm8, %v3233_v30 }
 0x76d   : > { %3323 = vmatprep.mubr.f32.mxu0 %v5439_v17  ;;  %v3066_v52 = vpop.permute.xlu0 %3065  ;;  %v3062_v55 = vpop.permute.xlu1 %3061 }
 0x770   : > { %3769 = vmatmul.mubr.msk.f32.gmra.mxu0 %vm585_vm8, %v3234_v46 }
 0x772   : > { %v3245_v9 = vpop.permute.xlu1 %3244  ;;  %v3240_v8 = vpop.permute.xlu0 %3239 }
 0x828   : > { %v3797_v39 = vpop.f32.mrf.mxu0 }
 0x829   : > { %v3146_v27 = vadd.f32 %v3797_v39, %v3066_v52 }
 0x82a   : > { %v3140_v36 = vpop.f32.mrf.mxu0 }
 0x82b   : > { %v3150_v48 = vmax.f32 %v3146_v27, 0.0  ;;  %v3141_v31 = vadd.f32 %v3140_v36, %v3062_v55 }
 0x82c   : > { %v3319_v18 = vpop.f32.mrf.mxu0 }
 0x82d   : > { %v3149_v47 = vmax.f32 %v3141_v31, 0.0  ;;  %3799 = vmatpush3.msra.mxu1 %v3150_v48  ;;  %v3320_v32 = vadd.f32 %v3319_v18, %v3240_v8 }
 0x82e   : > { %v3321_v44 = vpop.f32.mrf.mxu0  ;;  %3800 = vmatprep.subr.mxu1 %v5439_v17 }
 0x82f   : > { %3801 = vmatpush3.msra.mxu1 %v3149_v47  ;;  %v3322_v0 = vadd.f32 %v3321_v44, %v3240_v8  ;;  %v3330_v3 = vmax.f32 %v3320_v32, 0.0 }
 0x830   : > { %v3325_v19 = vpop.f32.mrf.mxu0  ;;  %3803 = vmatmul.mubr.msk.f32.vlgmr.msra.gmra.mxu1 %vm585_vm8, %v3057_v58 }
 0x831   : > { %3407 = vmatprep.mubr.f32.mxu1 %v5439_v17  ;;  %v3326_v26 = vadd.f32 %v3325_v19, %v3245_v9  ;;  %v3331_v53 = vmax.f32 %v3322_v0, 0.0  ;;  %v3338_v17 = vpop.permute.xlu1 %3337 }
 0x832   : > { %v3327_v5 = vpop.f32.mrf.mxu0 }
 0x833   : > { %v3328_v2 = vadd.f32 %v3327_v5, %v3245_v9  ;;  %v3332_v21 = vmax.f32 %v3326_v26, 0.0 }
 0x835   : > { %v3333_v15 = vmax.f32 %v3328_v2, 0.0  ;;  %v3155_v33 = vpop.permute.xlu1 %3154 }
 0x837   : > { %3371 = vmatprep.subr.mxu1 %v3333_v15 }
 0x838   : > { %3372 = vmatpush1.msra.mxu1 %v3332_v21 }
 0x839   : > { %3373 = vmatprep.subr.mxu1 %v3331_v53 }
 0x83a   : > { %3374 = vmatpush1.msra.mxu1 %v3330_v3 }
 0x83b   : > { %3770 = vmatmul.mubr.msk.f32.vlgmr.msra.gmra.mxu1 %vm585_vm8, %v3232_v43 }
 0x8f0   : > { %v3226_v57 = vpop.f32.mrf.mxu1 }
 0x8f1   : > { %v3227_v60 = vadd.f32 %v3226_v57, %v3155_v33 }
 0x8f2   : > { %v3804_v20 = vpop.f32.mrf.mxu1 }
 0x8f3   : > { %3231 = vst.msk [vmem:[%s486_s12] sm:$0x1] %vm3230_vm12, %v3227_v60 }
 0x8f4   : > { %3971 = shalt.err (!%p3968_p3)
}
 0x8f5   : > { %s3972_s22 = scalar_lea.hbm %s5276_s13, 16  ;;  %s3976_s29 = scalar_lea.hbm %s5343_s11, 32 }
 0x8f6   : > { %p3973_p4 = scmp.ne.s32.totalorder %s5276_s13, %s3972_s22  ;;  %p3977_p9 = scmp.lt.s32.totalorder %s5276_s13, %s5343_s11 }
 0x8f7   : > { %p3978_p10 = scmp.lt.s32.totalorder %s3976_s29, %s3972_s22 }
 0x8f8   : > { %p3974_p7 = pnand %p3973_p4, %p4174_p5 }
 0x8f9   : > { %p3979_p11 = por %p3978_p10, %p3977_p9 }
 0x8fa   : > { %p3975_p8 = pneg %p3974_p7 }
 0x8fc   : > { %p3980_p12 = pnand %p3979_p11, %p3975_p8 }
 0x8fe   : > { %3983 = shalt.err (!%p3980_p12)
}
 0x8ff   : > { %3806 = dma.vmem_to_hbm [thread:$0]  (%p4174_p5), %s3474_s30, 16, %s5276_s13, %s3447_s16   ;;  %v4074_v23 = vmov 1966171168   ;;  %v3409_v6 = vpop.f32.mrf.mxu1  ;;  %v5475_v41 = vld [vmem:[#allocation9_spill] sm:$0xff]  ;;  %v5476_v4 = vlaneseq }
 0x900   : > { %v3422_v38 = vunpack.c.l.s4 %v4074_v23  ;;  %v3410_v25 = vadd.f32 %v3409_v6, %v3338_v17  ;;  %s3648_s1 = sshll.u32 %s5269_s14, 1  ;;  %s3783_s2 = sshll.u32 %s4157_s21, 5 }
 0x901   : > { %v3411_v40 = vpop.f32.mrf.mxu1  ;;  %s480_s0 = scalar_lea.vmem [#allocation2], %s3648_s1  ;;  %vm3438_vm8 = vcmp.lt.s32.totalorder %v5476_v4, 256  ;;  %s3458_s16 = scalar_lea.hbm %s5342_s10, %s3783_s2 }
 0x902   : > { %v3423_v62 = vunpack.c.0.s8 %v3422_v38  ;;  %v3412_v35 = vadd.f32 %v3411_v40, %v3338_v17  ;;  %v3771_v12 = vclamps-f32 %v3410_v25, 20.0  ;;  %s3460_s15 = sshll.u32 %s480_s0, 4  ;;  %s3442_s22 = scalar_lea.sflag [#allocation3], %s5269_s14  ;;  %s3461_s15 = int_to_ptr.vmem [resolvable:$true] %s3460_s15 }
 0x903   : > { %s3984_s12 = scalar_lea.vmem %s3461_s15, 32  ;;  %s4075_s25 = smov [#allocation2]  }
 0x904   : > { %v3772_v13 = vclamps-f32 %v3412_v35, 20.0  ;;  %v3426_v59 = vsub.s32 %v3423_v62, %v5475_v41  ;;  %p3985_p13 = scmp.ne.s32.totalorder %s3461_s15, %s3984_s12  ;;  %s3988_s21 = sshll.u32 %s4075_s25, 4  ;;  %s3989_s21 = int_to_ptr.vmem [resolvable:$false] %s3988_s21 }
 0x905   : > { %s3990_s29 = scalar_lea.vmem %s3989_s21, 64  ;;  %p3991_p2 = scmp.lt.s32.totalorder %s3461_s15, %s3989_s21 }
 0x906   : > { %v3420_v7 = vcombine.low %v3771_v12, %v3772_v13  ;;  %p3986_p0 = pnand %p3985_p13, %p4174_p5  ;;  %p3992_p3 = scmp.lt.s32.totalorder %s3990_s29, %s3984_s12 }
 0x908   : > { %v3427_v29 = vrot.slane %v3420_v7, %v3426_v59  ;;  %p3987_p1 = pneg %p3986_p0  ;;  %p3993_p4 = por %p3992_p3, %p3991_p2 }
 0x90a   : > { %v3434_v28 = vrot.slane %v3427_v29, %v3426_v59  ;;  %p3994_p7 = pnand %p3993_p4, %p3987_p1 }
 0x90c   : > { %3440 = vst.msk [vmem:[%s480_s0] sm:$0x3] %vm3438_vm8, %v3434_v28 }
 0x90d   : > { %3997 = shalt.err (!%p3994_p7)
}
 0x90e   : > { %s3998_s24 = scalar_lea.hbm %s3458_s16, 32  ;;  %s4002_s2 = scalar_lea.hbm %s5342_s10, 64 }
 0x90f   : > { %p3999_p8 = scmp.ne.s32.totalorder %s3458_s16, %s3998_s24  ;;  %p4003_p11 = scmp.lt.s32.totalorder %s3458_s16, %s5342_s10 }
 0x910   : > { %p4004_p12 = scmp.lt.s32.totalorder %s4002_s2, %s3998_s24 }
 0x911   : > { %p4000_p9 = pnand %p3999_p8, %p4174_p5 }
 0x912   : > { %p4005_p13 = por %p4004_p12, %p4003_p11 }
 0x913   : > { %p4001_p10 = pneg %p4000_p9 }
 0x915   : > { %p4006_p0 = pnand %p4005_p13, %p4001_p10 }
 0x917   : > { %4009 = shalt.err (!%p4006_p0)
}
 0x918   : > { %3805 = dma.vmem_to_hbm [thread:$0]  (%p4174_p5), %s3461_s15, 32, %s3458_s16, %s3442_s22  }
 0x919 PF: > { %p3816_p1 = scmp.ge.s32.totalorder %s4048_s20, 2  ;;  %s3485_s13 = sand.u32 1, %s4036_s17  }
 0x91a   : > { %s3486_s12 = scalar_lea.sflag [#allocation3], %s3485_s13 }
 0x91b   : > { %p3810_p2 = pnand %p3816_p1, %p4178_p6 }
 0x91d   : > { %p3811_p3 = pneg %p3810_p2 }
 0x91f   : > { %4027 = dma.done.wait (%p3811_p3), %s3486_s12, 32  }
 0x920   : > { %4029 = vsyncadd (%p3811_p3), %s3486_s12, 4294967264  ;;  %s3495_s25 = scalar_lea.sflag [#allocation5], %s3485_s13 }
 0x921   : > { %4031 = dma.done.wait (%p3811_p3), %s3495_s25, 16  }
 0x922   : > { %4033 = vsyncadd (%p3811_p3), %s3495_s25, 4294967280  ;;  %p25_p5 = scmp.ge.s32.totalorder %s4161_s23, 4   ;;  %s5477_s17 = smov %s4040_s18 }
 0x923   : > { %s5478_s18 = smov %s4044_s19  ;;  %s5479_s19 = smov %s4172_s26 }
 0x924   : > { %s5480_s20 = smov %s4161_s23  ;;  %27 = sbr.rel (!%p25_p5) target bundleno = 9 (0x9), region = 133 }
 0x929   :  { %3499 = vsyncpa [#allocation3], 1 }
 0x92a   :  { %3501 = vsyncpa [#allocation3 + $0x1], 1 }
 0x92b   :  { %3502 = vsyncpa [#allocation5], 1 }
 0x92c   :  { %3504 = vsyncpa [#allocation5 + $0x1], 1 }

</bundles_post_ra>
